<compile_context>
chip_gen: v7x
topology: tpu7x:2x2x1
jax: 0.10.0
libtpu: 0.0.40
codegen_flags: <defaults>
</compile_context>

<pallas_src>
import jax
import jax.numpy as jnp
from jax.experimental import pallas as pl
from jax.experimental.pallas import tpu as pltpu


def _round_up(x, m):
    return ((x + m - 1) // m) * m


def _pick_block_n(n):
    """Samples per grid step.

    Whole batch if tiny (one invocation, no per-step overhead); otherwise a
    multiple of 8 so the (block_n, Fp) output block stays (8,128)-tileable and
    the grid keeps >= 2 steps for v7x's two TensorCores.
    """
    if n <= 8:
        return n
    for cand in (32, 16, 8):
        if n % cand == 0:
            return cand
    return n  # fallback: single block covering the whole batch


def bottleneck_pool_kernel(x_ref, wc_ref, scale_ref, shift_ref, out_ref):
    """1x1 conv (channel matmul) -> folded BN -> SiLU -> global average pool.

    x_ref:     (B_blk, C_in, HW) f32   -- NCHW kept, spatial flattened
    wc_ref:    (C_in, Fp)        bf16  -- conv weight, transposed, zero-padded
    scale_ref: (1, Fp)           f32   -- gamma / sqrt(var + eps)  (0 in pad)
    shift_ref: (1, Fp)           f32   -- beta - mean * scale      (0 in pad)
    out_ref:   (B_blk, Fp)       f32   -- pooled features, lane-dense
    """
    b_blk = x_ref.shape[0]
    wc = wc_ref[...]
    scale = scale_ref[...]
    shift = shift_ref[...]
    rows = []
    for b in range(b_blk):                       # static unroll, b_blk is small
        xb = x_ref[b]                            # (C_in, HW) f32
        xbt = xb.T.astype(jnp.bfloat16)          # on-chip transpose -> (HW, C_in)
        # 1x1 conv == channel matmul on the MXU (bf16 in, f32 accumulate)
        y = jnp.dot(xbt, wc, preferred_element_type=jnp.float32)    # (HW, Fp)
        y = y * scale + shift                    # folded BatchNorm (inference)
        y = y * jax.nn.sigmoid(y)                # SiLU
        # AdaptiveAvgPool2d((1,1)) == mean over spatial positions
        rows.append(jnp.mean(y, axis=0, keepdims=True))             # (1, Fp)
    out_ref[...] = jnp.concatenate(rows, axis=0)                    # (B_blk, Fp)


def classifier_kernel(p_ref, wl_ref, bl_ref, out_ref):
    """Linear classifier, run once over all pooled rows.

    p_ref: (N, Fp) f32, wl_ref: (Fp, Op) f32, bl_ref: (1, Op) f32,
    out_ref: (N, Op) f32 (Op = O padded to 128; padded cols are zero weight).
    """
    out_ref[...] = (
        jnp.dot(p_ref[...], wl_ref[...], preferred_element_type=jnp.float32)
        + bl_ref[...]
    ).astype(out_ref.dtype)


def custom_head_forward(x_nchw, params, *, block_n=None):
    """x_nchw: (N, 256, H, W) float32.  Returns (N, out_features) float32."""
    N, C_in, H, W = x_nchw.shape
    HW = H * W
    F = params["conv_w"].shape[0]
    O = params["fc_w"].shape[0]
    Fp = _round_up(F, 128)
    Op = _round_up(O, 128)
    eps = 1e-5

    # Fold BatchNorm (inference) into a per-channel affine.
    wc = params["conv_w"].reshape(F, C_in)                         # (F, C_in)
    scale = params["bn_gamma"] / jnp.sqrt(params["bn_var"] + eps)  # (F,)
    shift = params["bn_beta"] - params["bn_mean"] * scale          # (F,)

    # Zero-pad F -> Fp (padded features compute exactly 0 through conv/BN/SiLU)
    # and O -> Op so every load/store in the kernels is lane-dense.
    wc_p = jnp.zeros((C_in, Fp), jnp.bfloat16).at[:, :F].set(
        wc.T.astype(jnp.bfloat16))
    scale_p = jnp.zeros((1, Fp), jnp.float32).at[0, :F].set(scale)
    shift_p = jnp.zeros((1, Fp), jnp.float32).at[0, :F].set(shift)
    wl_p = jnp.zeros((Fp, Op), jnp.float32).at[:F, :O].set(params["fc_w"].T)
    bl_p = jnp.zeros((1, Op), jnp.float32).at[0, :O].set(params["fc_b"])

    # Keep NCHW: only flatten spatial dims (free reshape, no HBM transpose pass).
    x = x_nchw.reshape(N, C_in, HW)

    if block_n is None:
        block_n = _pick_block_n(N)
    assert N % block_n == 0, "batch must be divisible by block_n"
    grid_n = N // block_n

    # Kernel 1: conv + BN + SiLU + global average pool -> pooled (N, Fp).
    pooled = pl.pallas_call(
        bottleneck_pool_kernel,
        out_shape=jax.ShapeDtypeStruct((N, Fp), jnp.float32),
        grid_spec=pltpu.PrefetchScalarGridSpec(
            num_scalar_prefetch=0,
            grid=(grid_n,),
            in_specs=[
                pl.BlockSpec((block_n, C_in, HW), lambda i: (i, 0, 0)),
                pl.BlockSpec((C_in, Fp), lambda i: (0, 0)),   # grid-invariant
                pl.BlockSpec((1, Fp), lambda i: (0, 0)),
                pl.BlockSpec((1, Fp), lambda i: (0, 0)),
            ],
            out_specs=pl.BlockSpec((block_n, Fp), lambda i: (i, 0)),
        ),
        compiler_params=pltpu.CompilerParams(
            dimension_semantics=("parallel",),
            vmem_limit_bytes=32 * 1024 * 1024,
        ),
    )(x, wc_p, scale_p, shift_p)

    # Kernel 2: classifier Linear, once over the whole batch (lane-dense Op).
    logits_p = pl.pallas_call(
        classifier_kernel,
        out_shape=jax.ShapeDtypeStruct((N, Op), jnp.float32),
        grid_spec=pltpu.PrefetchScalarGridSpec(
            num_scalar_prefetch=0,
            grid=(1,),
            in_specs=[
                pl.BlockSpec((N, Fp), lambda i: (0, 0)),
                pl.BlockSpec((Fp, Op), lambda i: (0, 0)),
                pl.BlockSpec((1, Op), lambda i: (0, 0)),
            ],
            out_specs=pl.BlockSpec((N, Op), lambda i: (0, 0)),
        ),
        compiler_params=pltpu.CompilerParams(
            dimension_semantics=("arbitrary",)),
    )(pooled, wl_p, bl_p)

    return logits_p[:, :O]


def reference_forward(x_nchw, params):
    """Pure-JAX reference (mirrors the PyTorch eval-mode forward, f32)."""
    eps = 1e-5
    F = params["conv_w"].shape[0]
    wc = params["conv_w"].reshape(F, -1)                           # (F, C_in)
    y = jnp.einsum("nchw,fc->nfhw", x_nchw, wc)                    # 1x1 conv
    scale = params["bn_gamma"] / jnp.sqrt(params["bn_var"] + eps)
    shift = params["bn_beta"] - params["bn_mean"] * scale
    y = y * scale[None, :, None, None] + shift[None, :, None, None]
    y = y * jax.nn.sigmoid(y)                                      # SiLU
    y = jnp.mean(y, axis=(2, 3))                                   # avgpool+flatten
    return y @ params["fc_w"].T + params["fc_b"]                   # Linear


def init_params(key, in_features, out_features, c_in=256):
    ks = jax.random.split(key, 6)
    return {
        # nn.Conv2d(256, in_features, 1, bias=False): weight (F, 256, 1, 1)
        "conv_w": jax.random.normal(ks[0], (in_features, c_in, 1, 1),
                                    jnp.float32) * 0.05,
        # nn.BatchNorm2d(in_features): gamma, beta, running mean/var
        "bn_gamma": 1.0 + 0.1 * jax.random.normal(ks[1], (in_features,), jnp.float32),
        "bn_beta":  0.1 * jax.random.normal(ks[2], (in_features,), jnp.float32),
        "bn_mean":  0.05 * jax.random.normal(ks[3], (in_features,), jnp.float32),
        "bn_var":   jnp.abs(1.0 + 0.1 * jax.random.normal(ks[4], (in_features,),
                                                          jnp.float32)),
        # nn.Linear(in_features, out_features): weight (O, F), bias (O,)
        "fc_w": jax.random.normal(ks[5], (out_features, in_features),
                                  jnp.float32) * 0.05,
        "fc_b": jnp.linspace(-0.1, 0.1, out_features, dtype=jnp.float32),
    }


if __name__ == "__main__":
    key = jax.random.PRNGKey(0)
    k_x, k_p = jax.random.split(key)

    N, C_in, H, W = 2, 256, 16, 16        # C_in=256 is fixed by the module spec
    in_features, out_features = 64, 8     # dropout_rate irrelevant at inference

    x = jax.random.normal(k_x, (N, C_in, H, W), jnp.float32)
    params = init_params(k_p, in_features, out_features, C_in)

    out = jax.jit(custom_head_forward)(x, params)
    out = jax.block_until_ready(out)

    ref = reference_forward(x, params)
    assert out.shape == (N, out_features)
    # Conv matmul runs in bf16 on the MXU (f32 accumulation) -> loosened tol
    # vs. the pure-f32 reference.
    assert jnp.allclose(out, ref, atol=1e-2, rtol=1e-2), (
        f"max err {jnp.max(jnp.abs(out - ref))}")

    print("KERNEL_OK")
</pallas_src>

<mosaic_0001>
module attributes {stable_mosaic.version = 11 : i64} {
  func.func @bottleneck_pool_kernel(%arg0: i32, %arg1: memref<2x256x256xf32, #tpu.memory_space<vmem>>, %arg2: memref<256x128xbf16, #tpu.memory_space<vmem>>, %arg3: memref<1x128xf32, #tpu.memory_space<vmem>>, %arg4: memref<1x128xf32, #tpu.memory_space<vmem>>, %arg5: memref<2x128xf32, #tpu.memory_space<vmem>>) attributes {dimension_semantics = [#tpu.dimension_semantics<parallel>], iteration_bounds = array<i64: 1>, scalar_prefetch = 0 : i64, scratch_operands = 0 : i64, tpu.core_type = #tpu.core_type<tc>, window_params = [{transform_indices = @transform_0, window_bounds = array<i64: 2, 256, 256>}, {pipeline_mode = #tpu.pipeline_mode<synchronous>, transform_indices = @transform_1, window_bounds = array<i64: 256, 128>}, {pipeline_mode = #tpu.pipeline_mode<synchronous>, transform_indices = @transform_2, window_bounds = array<i64: 1, 128>}, {pipeline_mode = #tpu.pipeline_mode<synchronous>, transform_indices = @transform_3, window_bounds = array<i64: 1, 128>}, {transform_indices = @transform_4, window_bounds = array<i64: 2, 128>}]} {
    %c0 = arith.constant 0 : index
    %c0_0 = arith.constant 0 : index
    %0 = vector.load %arg2[%c0, %c0_0] : memref<256x128xbf16, #tpu.memory_space<vmem>>, vector<256x128xbf16>
    %c0_1 = arith.constant 0 : index
    %c0_2 = arith.constant 0 : index
    %1 = vector.load %arg3[%c0_1, %c0_2] : memref<1x128xf32, #tpu.memory_space<vmem>>, vector<1x128xf32>
    %c0_3 = arith.constant 0 : index
    %c0_4 = arith.constant 0 : index
    %2 = vector.load %arg4[%c0_3, %c0_4] : memref<1x128xf32, #tpu.memory_space<vmem>>, vector<1x128xf32>
    %c0_5 = arith.constant 0 : index
    %c0_6 = arith.constant 0 : index
    %c0_7 = arith.constant 0 : index
    %3 = vector.load %arg1[%c0_5, %c0_6, %c0_7] : memref<2x256x256xf32, #tpu.memory_space<vmem>>, vector<1x256x256xf32>
    %4 = vector.shape_cast %3 : vector<1x256x256xf32> to vector<256x256xf32>
    %5 = tpu.transpose %4, [1, 0] : vector<256x256xf32> -> vector<256x256xf32>
    %6 = arith.truncf %5 : vector<256x256xf32> to vector<256x256xbf16>
    %cst = arith.constant dense<0.000000e+00> : vector<256x128xf32>
    %7 = tpu.matmul %6, %0, %cst {dimension_numbers = #tpu.dot_dimension_numbers<[1], [0], [0], [1], [0, 0, 1, 1], [], []>} : vector<256x256xbf16>, vector<256x128xbf16>, vector<256x128xf32> -> vector<256x128xf32>
    %8 = vector.broadcast %1 : vector<1x128xf32> to vector<256x128xf32>
    %9 = arith.mulf %7, %8 : vector<256x128xf32>
    %10 = vector.broadcast %2 : vector<1x128xf32> to vector<256x128xf32>
    %11 = arith.addf %9, %10 : vector<256x128xf32>
    %12 = arith.negf %11 : vector<256x128xf32>
    %13 = math.exp %12 : vector<256x128xf32>
    %cst_8 = arith.constant 1.000000e+00 : f32
    %14 = vector.broadcast %cst_8 : f32 to vector<256x128xf32>
    %15 = arith.addf %14, %13 : vector<256x128xf32>
    %16 = arith.divf %14, %15 : vector<256x128xf32>
    %17 = arith.mulf %11, %16 : vector<256x128xf32>
    %cst_9 = arith.constant dense<0.000000e+00> : vector<128xf32>
    %18 = vector.multi_reduction <add>, %17, %cst_9 [0] : vector<256x128xf32> to vector<128xf32>
    %19 = vector.shape_cast %18 : vector<128xf32> to vector<1x128xf32>
    %cst_10 = arith.constant 2.560000e+02 : f32
    %20 = vector.broadcast %cst_10 : f32 to vector<1x128xf32>
    %21 = arith.divf %19, %20 : vector<1x128xf32>
    %c1 = arith.constant 1 : index
    %c0_11 = arith.constant 0 : index
    %c0_12 = arith.constant 0 : index
    %22 = vector.load %arg1[%c1, %c0_11, %c0_12] : memref<2x256x256xf32, #tpu.memory_space<vmem>>, vector<1x256x256xf32>
    %23 = vector.shape_cast %22 : vector<1x256x256xf32> to vector<256x256xf32>
    %24 = tpu.transpose %23, [1, 0] : vector<256x256xf32> -> vector<256x256xf32>
    %25 = arith.truncf %24 : vector<256x256xf32> to vector<256x256xbf16>
    %cst_13 = arith.constant dense<0.000000e+00> : vector<256x128xf32>
    %26 = tpu.matmul %25, %0, %cst_13 {dimension_numbers = #tpu.dot_dimension_numbers<[1], [0], [0], [1], [0, 0, 1, 1], [], []>} : vector<256x256xbf16>, vector<256x128xbf16>, vector<256x128xf32> -> vector<256x128xf32>
    %27 = vector.broadcast %1 : vector<1x128xf32> to vector<256x128xf32>
    %28 = arith.mulf %26, %27 : vector<256x128xf32>
    %29 = vector.broadcast %2 : vector<1x128xf32> to vector<256x128xf32>
    %30 = arith.addf %28, %29 : vector<256x128xf32>
    %31 = arith.negf %30 : vector<256x128xf32>
    %32 = math.exp %31 : vector<256x128xf32>
    %cst_14 = arith.constant 1.000000e+00 : f32
    %33 = vector.broadcast %cst_14 : f32 to vector<256x128xf32>
    %34 = arith.addf %33, %32 : vector<256x128xf32>
    %35 = arith.divf %33, %34 : vector<256x128xf32>
    %36 = arith.mulf %30, %35 : vector<256x128xf32>
    %cst_15 = arith.constant dense<0.000000e+00> : vector<128xf32>
    %37 = vector.multi_reduction <add>, %36, %cst_15 [0] : vector<256x128xf32> to vector<128xf32>
    %38 = vector.shape_cast %37 : vector<128xf32> to vector<1x128xf32>
    %cst_16 = arith.constant 2.560000e+02 : f32
    %39 = vector.broadcast %cst_16 : f32 to vector<1x128xf32>
    %40 = arith.divf %38, %39 : vector<1x128xf32>
    %41 = tpu.concatenate %21, %40 in 0 : vector<1x128xf32>, vector<1x128xf32> -> vector<2x128xf32>
    %c0_17 = arith.constant 0 : index
    %c0_18 = arith.constant 0 : index
    %42 = vector.load %arg5[%c0_17, %c0_18] : memref<2x128xf32, #tpu.memory_space<vmem>>, vector<2x128xf32>
    tpu.vector_store %arg5[%c0_17, %c0_18], %41 {strides = array<i32>} : memref<2x128xf32, #tpu.memory_space<vmem>>, vector<2x128xf32>,
    return
  }
  func.func @transform_0(%arg0: i32) -> (i32, i32, i32) {
    %c0_i32 = arith.constant 0 : i32
    %c0_i32_0 = arith.constant 0 : i32
    %c0_i32_1 = arith.constant 0 : i32
    return %arg0, %c0_i32, %c0_i32_0 : i32, i32, i32
  }
  func.func @transform_1(%arg0: i32) -> (i32, i32) {
    %c0_i32 = arith.constant 0 : i32
    %c0_i32_0 = arith.constant 0 : i32
    %c0_i32_1 = arith.constant 0 : i32
    return %c0_i32, %c0_i32_0 : i32, i32
  }
  func.func @transform_2(%arg0: i32) -> (i32, i32) {
    %c0_i32 = arith.constant 0 : i32
    %c0_i32_0 = arith.constant 0 : i32
    %c0_i32_1 = arith.constant 0 : i32
    return %c0_i32, %c0_i32_0 : i32, i32
  }
  func.func @transform_3(%arg0: i32) -> (i32, i32) {
    %c0_i32 = arith.constant 0 : i32
    %c0_i32_0 = arith.constant 0 : i32
    %c0_i32_1 = arith.constant 0 : i32
    return %c0_i32, %c0_i32_0 : i32, i32
  }
  func.func @transform_4(%arg0: i32) -> (i32, i32) {
    %c0_i32 = arith.constant 0 : i32
    %c0_i32_0 = arith.constant 0 : i32
    return %arg0, %c0_i32 : i32, i32
  }
}

module attributes {stable_mosaic.version = 11 : i64} {
  func.func @classifier_kernel(%arg0: i32, %arg1: memref<2x128xf32, #tpu.memory_space<vmem>>, %arg2: memref<128x128xf32, #tpu.memory_space<vmem>>, %arg3: memref<1x128xf32, #tpu.memory_space<vmem>>, %arg4: memref<2x128xf32, #tpu.memory_space<vmem>>) attributes {dimension_semantics = [#tpu.dimension_semantics<arbitrary>], iteration_bounds = array<i64: 1>, scalar_prefetch = 0 : i64, scratch_operands = 0 : i64, tpu.core_type = #tpu.core_type<tc>, window_params = [{pipeline_mode = #tpu.pipeline_mode<synchronous>, transform_indices = @transform_0, window_bounds = array<i64: 2, 128>}, {pipeline_mode = #tpu.pipeline_mode<synchronous>, transform_indices = @transform_1, window_bounds = array<i64: 128, 128>}, {pipeline_mode = #tpu.pipeline_mode<synchronous>, transform_indices = @transform_2, window_bounds = array<i64: 1, 128>}, {pipeline_mode = #tpu.pipeline_mode<synchronous>, transform_indices = @transform_3, window_bounds = array<i64: 2, 128>}]} {
    %c0 = arith.constant 0 : index
    %c0_0 = arith.constant 0 : index
    %0 = vector.load %arg1[%c0, %c0_0] : memref<2x128xf32, #tpu.memory_space<vmem>>, vector<2x128xf32>
    %c0_1 = arith.constant 0 : index
    %c0_2 = arith.constant 0 : index
    %1 = vector.load %arg2[%c0_1, %c0_2] : memref<128x128xf32, #tpu.memory_space<vmem>>, vector<128x128xf32>
    %cst = arith.constant dense<0.000000e+00> : vector<2x128xf32>
    %2 = tpu.matmul %0, %1, %cst {dimension_numbers = #tpu.dot_dimension_numbers<[1], [0], [0], [1], [0, 0, 1, 1], [], []>} : vector<2x128xf32>, vector<128x128xf32>, vector<2x128xf32> -> vector<2x128xf32>
    %c0_3 = arith.constant 0 : index
    %c0_4 = arith.constant 0 : index
    %3 = vector.load %arg3[%c0_3, %c0_4] : memref<1x128xf32, #tpu.memory_space<vmem>>, vector<1x128xf32>
    %4 = vector.broadcast %3 : vector<1x128xf32> to vector<2x128xf32>
    %5 = arith.addf %2, %4 : vector<2x128xf32>
    %c0_5 = arith.constant 0 : index
    %c0_6 = arith.constant 0 : index
    %6 = vector.load %arg4[%c0_5, %c0_6] : memref<2x128xf32, #tpu.memory_space<vmem>>, vector<2x128xf32>
    tpu.vector_store %arg4[%c0_5, %c0_6], %5 {strides = array<i32>} : memref<2x128xf32, #tpu.memory_space<vmem>>, vector<2x128xf32>,
    return
  }
  func.func @transform_0(%arg0: i32) -> (i32, i32) {
    %c0_i32 = arith.constant 0 : i32
    %c0_i32_0 = arith.constant 0 : i32
    %c0_i32_1 = arith.constant 0 : i32
    return %c0_i32, %c0_i32_0 : i32, i32
  }
  func.func @transform_1(%arg0: i32) -> (i32, i32) {
    %c0_i32 = arith.constant 0 : i32
    %c0_i32_0 = arith.constant 0 : i32
    %c0_i32_1 = arith.constant 0 : i32
    return %c0_i32, %c0_i32_0 : i32, i32
  }
  func.func @transform_2(%arg0: i32) -> (i32, i32) {
    %c0_i32 = arith.constant 0 : i32
    %c0_i32_0 = arith.constant 0 : i32
    %c0_i32_1 = arith.constant 0 : i32
    return %c0_i32, %c0_i32_0 : i32, i32
  }
  func.func @transform_3(%arg0: i32) -> (i32, i32) {
    %c0_i32 = arith.constant 0 : i32
    %c0_i32_0 = arith.constant 0 : i32
    %c0_i32_1 = arith.constant 0 : i32
    return %c0_i32, %c0_i32_0 : i32, i32
  }
}

</mosaic_0001>

<bundles_post_ra>
// kernel: custom_head_forward.3
= control target key start
LH: loop header
LB: loop body
LE: loop exit
PB: predicated region body
PF: predicated region fallthrough
CT: control target
= control target key end

     0   :  { %v229_v3 = vmov 0.0|0.0   ;;  %vm230_vm0 = vmmov 0   ;;  %v231_v6 = vmov 0.0   ;;  %s319_s0 = inlined_call_operand.vmem [shape: f32[2,128], index: 0, kind: input, shape index: {}]   ;;  %s320_s1 = inlined_call_operand.vmem [shape: f32[128,128], index: 1, kind: input, shape index: {}]   ;;  %s321_s2 = inlined_call_operand.vmem [shape: f32[1,128], index: 2, kind: input, shape index: {}]   ;;  %s322_s3 = inlined_call_operand.hbm [shape: f32[2,128], index: 3, kind: output, shape index: {}]  }
   0x1   :  { %v16_v0 = vld [vmem:[%s320_s1] sm:$0xff]  ;;  %v17_v1 = vld [vmem:[%s320_s1 + $0x8] sm:$0xff]  ;;  %v18_v2 = vld [vmem:[%s320_s1 + $0x10] sm:$0xff]  ;;  %177 = vmatprep.subr.bf16.mxu0 %v229_v3  ;;  %174 = vmatprep.mubr.msk.f32.mxu0 %vm230_vm0, %v231_v6 }
   0x2   :  { %v178_v4 = vpack.c.bf16 %v17_v1, %v16_v0  ;;  %v19_v5 = vld [vmem:[%s320_s1 + $0x18] sm:$0xff]  ;;  %v20_v8 = vld [vmem:[%s320_s1 + $0x20] sm:$0xff]  ;;  %v21_v9 = vld [vmem:[%s320_s1 + $0x28] sm:$0xff] }
   0x3   :  { %v181_v7 = vpack.c.bf16 %v19_v5, %v18_v2 }
   0x4   :  { %179 = vmatpush3.bf16.msra.mxu0 %v178_v4 }
   0x5   :  { %180 = vmatprep.subr.bf16.mxu0 %v229_v3 }
   0x6   :  { %8 = vsyncpa [#allocation3], 0  ;;  %v184_v10 = vpack.c.bf16 %v21_v9, %v20_v8  ;;  %v22_v11 = vld [vmem:[%s320_s1 + $0x30] sm:$0xff]  ;;  %v23_v12 = vld [vmem:[%s320_s1 + $0x38] sm:$0xff]  ;;  %s232_s21 = smov [#allocation2]  }
   0x7   :  { %v187_v13 = vpack.c.bf16 %v23_v12, %v22_v11  ;;  %v24_v14 = vld [vmem:[%s320_s1 + $0x40] sm:$0xff]  ;;  %v25_v15 = vld [vmem:[%s320_s1 + $0x48] sm:$0xff]  ;;  %v26_v17 = vld [vmem:[%s320_s1 + $0x50] sm:$0xff]  ;;  %s116_s22 = sshll.u32 %s232_s21, 4  ;;  %s117_s22 = int_to_ptr.vmem [resolvable:$true] %s116_s22 }
   0x8   :  { %182 = vmatpush3.bf16.msra.mxu0 %v181_v7  ;;  %v190_v16 = vpack.c.bf16 %v25_v15, %v24_v14  ;;  %v27_v18 = vld [vmem:[%s320_s1 + $0x58] sm:$0xff]  ;;  %v28_v20 = vld [vmem:[%s320_s1 + $0x60] sm:$0xff]  ;;  %v29_v21 = vld [vmem:[%s320_s1 + $0x68] sm:$0xff]  ;;  %p210_p1 = scmp.lt.s32.totalorder %s117_s22, %s117_s22 }
   0x9   :  { %183 = vmatprep.subr.bf16.mxu0 %v229_v3  ;;  %v193_v19 = vpack.c.bf16 %v27_v18, %v26_v17  ;;  %v196_v22 = vpack.c.bf16 %v29_v21, %v28_v20  ;;  %v30_v23 = vld [vmem:[%s320_s1 + $0x70] sm:$0xff]  ;;  %v31_v24 = vld [vmem:[%s320_s1 + $0x78] sm:$0xff]  ;;  %v15_v26 = vld [vmem:[%s319_s0] sm:$0x3]  ;;  %s205_s1 = scalar_lea.vmem %s117_s22, 32 }
   0xa   :  { %v199_v25 = vpack.c.bf16 %v31_v24, %v30_v23  ;;  %v124_v27 = vld [vmem:[%s321_s2] ss:$0 sm:$0xff]  ;;  %p206_p0 = scmp.ne.s32.totalorder %s117_s22, %s205_s1  ;;  %p211_p2 = scmp.lt.s32.totalorder %s205_s1, %s205_s1 }
   0xc   :  { %185 = vmatpush3.bf16.msra.mxu0 %v184_v10  ;;  %p212_p3 = por %p211_p2, %p210_p1 }
   0xd   :  { %186 = vmatprep.subr.bf16.mxu0 %v229_v3 }
   0xe   :  { %p213_p4 = pnand %p212_p3, %p206_p0 }
  0x10   :  { %188 = vmatpush3.bf16.msra.mxu0 %v187_v13 }
  0x11   :  { %189 = vmatprep.subr.bf16.mxu0 %v229_v3 }
  0x14   :  { %191 = vmatpush3.bf16.msra.mxu0 %v190_v16 }
  0x15   :  { %192 = vmatprep.subr.bf16.mxu0 %v229_v3 }
  0x18   :  { %194 = vmatpush3.bf16.msra.mxu0 %v193_v19 }
  0x19   :  { %195 = vmatprep.subr.bf16.mxu0 %v229_v3 }
  0x1c   :  { %197 = vmatpush3.bf16.msra.mxu0 %v196_v22 }
  0x1d   :  { %198 = vmatprep.subr.bf16.mxu0 %v229_v3 }
  0x20   :  { %200 = vmatpush3.bf16.msra.mxu0 %v199_v25 }
  0x23   :  { %175 = vmatmul.mubr.f32.vlgmr.msra.gmra.mrb[0].mxu0 %v15_v26 }
  0xf6   :  { %v105_v28 = vpop.f32.mrb[0].mxu0 }
  0xf7   :  { %v106_v29 = vadd.f32 %v124_v27, %v105_v28  ;;  %v176_v30 = vpop.f32.mrb[1].mxu0 }
  0xf9   :  { %109 = vst [vmem:[#allocation2] sm:$0x3] %v106_v29 }
  0xfa   :  { %216 = shalt.err (!%p213_p4)
}
  0xfb   :  { %s217_s24 = scalar_lea.hbm %s322_s3, 32 }
  0xfc   :  { %p218_p5 = scmp.ne.s32.totalorder %s322_s3, %s217_s24  ;;  %p221_p6 = scmp.lt.u32.totalorder %s217_s24, %s322_s3 }
  0xfe   :  { %p223_p7 = pnand %p221_p6, %p218_p5 }
 0x100   :  { %226 = shalt.err (!%p223_p7)
}
 0x101   :  { %119 = dma.vmem_to_hbm [thread:$0]  %s117_s22, 32, %s322_s3, [#allocation3]  }
 0x102   :  { %227 = dma.done.wait [#allocation3], 32  }
 0x103   :  { %228 = vsyncadd [#allocation3], 4294967264 }
 0x104   :  { %123 = vsyncpa [#allocation3], 1 }

// kernel: custom_head_forward.2
= control target key start
LH: loop header
LB: loop body
LE: loop exit
PB: predicated region body
PF: predicated region fallthrough
CT: control target
= control target key end

     0   :  { %vm1584_vm0 = vcmask 1040384   ;;  %s3624_s0 = inlined_call_operand.vmem [shape: f32[2,256,256], index: 0, kind: input, shape index: {}]   ;;  %s3625_s1 = inlined_call_operand.vmem [shape: bf16[256,128], index: 1, kind: input, shape index: {}]   ;;  %s3626_s2 = inlined_call_operand.vmem [shape: f32[1,128], index: 2, kind: input, shape index: {}]   ;;  %s3627_s3 = inlined_call_operand.vmem [shape: f32[1,128], index: 3, kind: input, shape index: {}]   ;;  %s3628_s4 = inlined_call_operand.vmem [shape: f32[2,128], index: 4, kind: output, shape index: {}]  }
   0x1   :  { %v84_v0 = vld [vmem:[%s3624_s0 + $0x100] sm:$0xff]  ;;  %v86_v5 = vld [vmem:[%s3624_s0 + $0x110] sm:$0xff] }
   0x2   :  { %v1673_v1 = vld [vmem:[%s3624_s0 + $0x300] sm:$0xff]  ;;  %v1675_v6 = vld [vmem:[%s3624_s0 + $0x310] sm:$0xff] }
   0x3   :  { %v52_v2 = vld [vmem:[%s3624_s0] sm:$0xff]  ;;  %v1961_v3 = vpack.i.bf16 %v1673_v1, %v84_v0  ;;  %v54_v8 = vld [vmem:[%s3624_s0 + $0x10] sm:$0xff]  ;;  %v1963_v10 = vpack.i.bf16 %v1675_v6, %v86_v5  ;;  %v2411_v6 = vld [vmem:[%s3625_s1 + $0x48] sm:$0xff]  }
   0x4   :  { %v1641_v4 = vld [vmem:[%s3624_s0 + $0x200] sm:$0xff]  ;;  %v1643_v9 = vld [vmem:[%s3624_s0 + $0x210] sm:$0xff] }
   0x5   :  { %v2073_v7 = vpack.i.bf16 %v1641_v4, %v52_v2  ;;  %1962 = vxpose.xlu0.b32.start [1/16] %v1961_v3, 128  ;;  %v2075_v11 = vpack.i.bf16 %v1643_v9, %v54_v8  ;;  %v88_v12 = vld [vmem:[%s3624_s0 + $0x120] sm:$0xff]  ;;  %v90_v18 = vld [vmem:[%s3624_s0 + $0x130] sm:$0xff]  ;;  %v2412_v9 = vld [vmem:[%s3625_s1 + $0x8] sm:$0xff]  }
   0x6   :  { %v1677_v13 = vld [vmem:[%s3624_s0 + $0x320] sm:$0xff]  ;;  %v1679_v19 = vld [vmem:[%s3624_s0 + $0x330] sm:$0xff] }
   0x7   :  { %2074 = vxpose.xlu1.b32.start [1/16] %v2073_v7, 128  ;;  %v56_v14 = vld [vmem:[%s3624_s0 + $0x20] sm:$0xff]  ;;  %v1965_v16 = vpack.i.bf16 %v1677_v13, %v88_v12  ;;  %v58_v20 = vld [vmem:[%s3624_s0 + $0x30] sm:$0xff]  ;;  %v1967_v22 = vpack.i.bf16 %v1679_v19, %v90_v18  ;;  %v2415_v18 = vld [vmem:[%s3625_s1 + $0x58] sm:$0xff]  }
   0x8   :  { %v1645_v15 = vld [vmem:[%s3624_s0 + $0x220] sm:$0xff]  ;;  %v1647_v21 = vld [vmem:[%s3624_s0 + $0x230] sm:$0xff] }
   0x9   :  { %1964 = vxpose.xlu0.b32.cont [2/16] %v1963_v10, 128  ;;  %v2077_v17 = vpack.i.bf16 %v1645_v15, %v56_v14  ;;  %v2079_v23 = vpack.i.bf16 %v1647_v21, %v58_v20  ;;  %v92_v24 = vld [vmem:[%s3624_s0 + $0x140] sm:$0xff]  ;;  %v94_v30 = vld [vmem:[%s3624_s0 + $0x150] sm:$0xff]  ;;  %v2416_v20 = vld [vmem:[%s3625_s1 + $0x18] sm:$0xff]  }
   0xa   :  { %v1681_v25 = vld [vmem:[%s3624_s0 + $0x340] sm:$0xff]  ;;  %v1683_v31 = vld [vmem:[%s3624_s0 + $0x350] sm:$0xff] }
   0xb   :  { %2076 = vxpose.xlu1.b32.cont [2/16] %v2075_v11, 128  ;;  %v60_v26 = vld [vmem:[%s3624_s0 + $0x40] sm:$0xff]  ;;  %v1969_v28 = vpack.i.bf16 %v1681_v25, %v92_v24  ;;  %v62_v32 = vld [vmem:[%s3624_s0 + $0x50] sm:$0xff]  ;;  %v1971_v34 = vpack.i.bf16 %v1683_v31, %v94_v30 }
   0xc   :  { %v1649_v27 = vld [vmem:[%s3624_s0 + $0x240] sm:$0xff]  ;;  %v1651_v33 = vld [vmem:[%s3624_s0 + $0x250] sm:$0xff] }
   0xd   :  { %1966 = vxpose.xlu0.b32.cont [3/16] %v1965_v16, 128  ;;  %v2081_v29 = vpack.i.bf16 %v1649_v27, %v60_v26  ;;  %v2083_v35 = vpack.i.bf16 %v1651_v33, %v62_v32  ;;  %v96_v36 = vld [vmem:[%s3624_s0 + $0x160] sm:$0xff]  ;;  %v98_v42 = vld [vmem:[%s3624_s0 + $0x170] sm:$0xff] }
   0xe   :  { %v1685_v37 = vld [vmem:[%s3624_s0 + $0x360] sm:$0xff]  ;;  %v1687_v43 = vld [vmem:[%s3624_s0 + $0x370] sm:$0xff] }
   0xf   :  { %2078 = vxpose.xlu1.b32.cont [3/16] %v2077_v17, 128  ;;  %v64_v38 = vld [vmem:[%s3624_s0 + $0x60] sm:$0xff]  ;;  %v1973_v40 = vpack.i.bf16 %v1685_v37, %v96_v36  ;;  %v66_v44 = vld [vmem:[%s3624_s0 + $0x70] sm:$0xff]  ;;  %v1975_v46 = vpack.i.bf16 %v1687_v43, %v98_v42 }
  0x10   :  { %v1653_v39 = vld [vmem:[%s3624_s0 + $0x260] sm:$0xff]  ;;  %v1655_v45 = vld [vmem:[%s3624_s0 + $0x270] sm:$0xff] }
  0x11   :  { %1968 = vxpose.xlu0.b32.cont [4/16] %v1967_v22, 128  ;;  %v2085_v41 = vpack.i.bf16 %v1653_v39, %v64_v38  ;;  %v2087_v47 = vpack.i.bf16 %v1655_v45, %v66_v44  ;;  %v100_v48 = vld [vmem:[%s3624_s0 + $0x180] sm:$0xff]  ;;  %v102_v54 = vld [vmem:[%s3624_s0 + $0x190] sm:$0xff]  ;;  %v2420_v39 = vld [vmem:[%s3625_s1 + $0x28] sm:$0xff]  }
  0x12   :  { %v1689_v49 = vld [vmem:[%s3624_s0 + $0x380] sm:$0xff]  ;;  %v1691_v55 = vld [vmem:[%s3624_s0 + $0x390] sm:$0xff] }
  0x13   :  { %2080 = vxpose.xlu1.b32.cont [4/16] %v2079_v23, 128  ;;  %v68_v50 = vld [vmem:[%s3624_s0 + $0x80] sm:$0xff]  ;;  %v1977_v52 = vpack.i.bf16 %v1689_v49, %v100_v48  ;;  %v70_v56 = vld [vmem:[%s3624_s0 + $0x90] sm:$0xff]  ;;  %v1979_v59 = vpack.i.bf16 %v1691_v55, %v102_v54  ;;  %v53_v48 = vld [vmem:[%s3624_s0 + $0x8] sm:$0xff] }
  0x14   :  { %v1657_v51 = vld [vmem:[%s3624_s0 + $0x280] sm:$0xff]  ;;  %v1659_v57 = vld [vmem:[%s3624_s0 + $0x290] sm:$0xff]  ;;  %v1642_v49 = vld [vmem:[%s3624_s0 + $0x208] sm:$0xff] }
  0x15   :  { %1970 = vxpose.xlu0.b32.cont [5/16] %v1969_v28, 128  ;;  %v2089_v53 = vpack.i.bf16 %v1657_v51, %v68_v50  ;;  %v104_v58 = vld [vmem:[%s3624_s0 + $0x1a0] sm:$0xff]  ;;  %v2091_v63 = vpack.i.bf16 %v1659_v57, %v70_v56  ;;  %v106_v2 = vld [vmem:[%s3624_s0 + $0x1b0] sm:$0xff]  ;;  %v2423_v50 = vld [vmem:[%s3625_s1 + $0x78] sm:$0xff]  }
  0x16   :  { %v1693_v60 = vld [vmem:[%s3624_s0 + $0x3a0] sm:$0xff]  ;;  %v1695_v4 = vld [vmem:[%s3624_s0 + $0x3b0] sm:$0xff]  ;;  %v87_v54 = vld [vmem:[%s3624_s0 + $0x118] sm:$0xff] }
  0x17   :  { %2082 = vxpose.xlu1.b32.cont [5/16] %v2081_v29, 128  ;;  %v72_v61 = vld [vmem:[%s3624_s0 + $0xa0] sm:$0xff]  ;;  %v1981_v3 = vpack.i.bf16 %v1693_v60, %v104_v58  ;;  %v74_v7 = vld [vmem:[%s3624_s0 + $0xb0] sm:$0xff]  ;;  %v1983_v11 = vpack.i.bf16 %v1695_v4, %v106_v2  ;;  %v1676_v55 = vld [vmem:[%s3624_s0 + $0x318] sm:$0xff] }
  0x18   :  { %v1661_v62 = vld [vmem:[%s3624_s0 + $0x2a0] sm:$0xff]  ;;  %v1663_v8 = vld [vmem:[%s3624_s0 + $0x2b0] sm:$0xff]  ;;  %v55_v56 = vld [vmem:[%s3624_s0 + $0x18] sm:$0xff]  ;;  %v2187_v58 = vpack.i.bf16 %v1676_v55, %v87_v54 }
  0x19   :  { %1972 = vxpose.xlu0.b32.cont [6/16] %v1971_v34, 128  ;;  %v2409_v0 = vld [vmem:[%s3625_s1 + $0x40] sm:$0xff]   ;;  %v2093_v5 = vpack.i.bf16 %v1661_v62, %v72_v61  ;;  %v2413_v12 = vld [vmem:[%s3625_s1 + $0x50] sm:$0xff]   ;;  %v2095_v13 = vpack.i.bf16 %v1663_v8, %v74_v7  ;;  %v2419_v34 = vld [vmem:[%s3625_s1 + $0x68] sm:$0xff]  }
  0x1a   :  { %v2410_v1 = vld [vmem:[%s3625_s1] sm:$0xff]   ;;  %1737 = vmatprep.subr.bf16.mxu0 %v2409_v0  ;;  %1849 = vmatprep.subr.bf16.mxu1 %v2409_v0  ;;  %v2414_v15 = vld [vmem:[%s3625_s1 + $0x10] sm:$0xff]   ;;  %v1644_v57 = vld [vmem:[%s3624_s0 + $0x218] sm:$0xff] }
  0x1b   :  { %2084 = vxpose.xlu1.b32.cont [6/16] %v2083_v35, 128  ;;  %1738 = vmatpush3.bf16.msra.mxu0 %v2410_v1  ;;  %v108_v10 = vld [vmem:[%s3624_s0 + $0x1c0] sm:$0xff]  ;;  %v110_v22 = vld [vmem:[%s3624_s0 + $0x1d0] sm:$0xff]  ;;  %v89_v60 = vld [vmem:[%s3624_s0 + $0x128] sm:$0xff] }
  0x1c   :  { %1850 = vmatpush3.bf16.msra.mxu1 %v2410_v1  ;;  %1739 = vmatprep.subr.bf16.mxu0 %v2411_v6  ;;  %v1697_v14 = vld [vmem:[%s3624_s0 + $0x3c0] sm:$0xff]  ;;  %v1699_v23 = vld [vmem:[%s3624_s0 + $0x3d0] sm:$0xff]  ;;  %v1678_v61 = vld [vmem:[%s3624_s0 + $0x328] sm:$0xff] }
  0x1d   :  { %1974 = vxpose.xlu0.b32.cont [7/16] %v1973_v40, 128  ;;  %1851 = vmatprep.subr.bf16.mxu1 %v2411_v6  ;;  %v76_v16 = vld [vmem:[%s3624_s0 + $0xc0] sm:$0xff]  ;;  %v1985_v19 = vpack.i.bf16 %v1697_v14, %v108_v10  ;;  %v78_v24 = vld [vmem:[%s3624_s0 + $0xd0] sm:$0xff]  ;;  %v1987_v27 = vpack.i.bf16 %v1699_v23, %v110_v22  ;;  %v57_v62 = vld [vmem:[%s3624_s0 + $0x28] sm:$0xff]  ;;  %v2189_v0 = vpack.i.bf16 %v1678_v61, %v89_v60 }
  0x1e   :  { %v1665_v17 = vld [vmem:[%s3624_s0 + $0x2c0] sm:$0xff]  ;;  %v1667_v25 = vld [vmem:[%s3624_s0 + $0x2d0] sm:$0xff]  ;;  %v91_v2 = vld [vmem:[%s3624_s0 + $0x138] sm:$0xff] }
  0x1f   :  { %2086 = vxpose.xlu1.b32.cont [7/16] %v2085_v41, 128  ;;  %1740 = vmatpush3.bf16.msra.mxu0 %v2412_v9  ;;  %v2097_v21 = vpack.i.bf16 %v1665_v17, %v76_v16  ;;  %v2417_v26 = vld [vmem:[%s3625_s1 + $0x60] sm:$0xff]   ;;  %v2099_v31 = vpack.i.bf16 %v1667_v25, %v78_v24  ;;  %v114_v35 = vld [vmem:[%s3624_s0 + $0x1f0] sm:$0xff]  ;;  %v59_v4 = vld [vmem:[%s3624_s0 + $0x38] sm:$0xff] }
  0x20   :  { %1852 = vmatpush3.bf16.msra.mxu1 %v2412_v9  ;;  %1741 = vmatprep.subr.bf16.mxu0 %v2413_v12  ;;  %v112_v28 = vld [vmem:[%s3624_s0 + $0x1e0] sm:$0xff]  ;;  %v1703_v36 = vld [vmem:[%s3624_s0 + $0x3f0] sm:$0xff]  ;;  %v93_v8 = vld [vmem:[%s3624_s0 + $0x148] sm:$0xff] }
  0x21   :  { %1976 = vxpose.xlu0.b32.cont [8/16] %v1975_v46, 128  ;;  %1853 = vmatprep.subr.bf16.mxu1 %v2413_v12  ;;  %v1701_v29 = vld [vmem:[%s3624_s0 + $0x3e0] sm:$0xff]  ;;  %v82_v38 = vld [vmem:[%s3624_s0 + $0xf0] sm:$0xff]  ;;  %v1991_v43 = vpack.i.bf16 %v1703_v36, %v114_v35  ;;  %v85_v46 = vld [vmem:[%s3624_s0 + $0x108] sm:$0xff] }
  0x22   :  { %v2418_v30 = vld [vmem:[%s3625_s1 + $0x20] sm:$0xff]   ;;  %v1989_v37 = vpack.i.bf16 %v1701_v29, %v112_v28  ;;  %v1671_v41 = vld [vmem:[%s3624_s0 + $0x2f0] sm:$0xff]  ;;  %v1682_v9 = vld [vmem:[%s3624_s0 + $0x348] sm:$0xff] }
  0x23   :  { %2088 = vxpose.xlu1.b32.cont [8/16] %v2087_v47, 128  ;;  %1742 = vmatpush3.bf16.msra.mxu0 %v2414_v15  ;;  %v80_v32 = vld [vmem:[%s3624_s0 + $0xe0] sm:$0xff]  ;;  %v2421_v42 = vld [vmem:[%s3625_s1 + $0x70] sm:$0xff]   ;;  %v2103_v45 = vpack.i.bf16 %v1671_v41, %v82_v38  ;;  %v1674_v47 = vld [vmem:[%s3624_s0 + $0x308] sm:$0xff]  ;;  %v2193_v12 = vpack.i.bf16 %v1682_v9, %v93_v8 }
  0x24   :  { %1854 = vmatpush3.bf16.msra.mxu1 %v2414_v15  ;;  %1743 = vmatprep.subr.bf16.mxu0 %v2415_v18  ;;  %v1669_v33 = vld [vmem:[%s3624_s0 + $0x2e0] sm:$0xff]  ;;  %v2422_v44 = vld [vmem:[%s3625_s1 + $0x30] sm:$0xff]   ;;  %v2185_v51 = vpack.i.bf16 %v1674_v47, %v85_v46  ;;  %v61_v10 = vld [vmem:[%s3624_s0 + $0x48] sm:$0xff] }
  0x25   :  { %1978 = vxpose.xlu0.b32.cont [9/16] %v1977_v52, 128  ;;  %1855 = vmatprep.subr.bf16.mxu1 %v2415_v18  ;;  %v2101_v40 = vpack.i.bf16 %v1669_v33, %v80_v32  ;;  %v2424_v52 = vld [vmem:[%s3625_s1 + $0x38] sm:$0xff]   ;;  %v65_v22 = vld [vmem:[%s3624_s0 + $0x68] sm:$0xff] }
  0x26   :  { %v95_v14 = vld [vmem:[%s3624_s0 + $0x158] sm:$0xff]  ;;  %v1654_v23 = vld [vmem:[%s3624_s0 + $0x268] sm:$0xff] }
  0x27   :  { %2090 = vxpose.xlu1.b32.cont [9/16] %v2089_v53, 128  ;;  %1744 = vmatpush3.bf16.msra.mxu0 %v2416_v20  ;;  %v2297_v53 = vpack.i.bf16 %v1642_v49, %v53_v48  ;;  %v1684_v15 = vld [vmem:[%s3624_s0 + $0x358] sm:$0xff]  ;;  %v2309_v25 = vpack.i.bf16 %v1654_v23, %v65_v22  ;;  %v101_v32 = vld [vmem:[%s3624_s0 + $0x188] sm:$0xff] }
  0x28   :  { %1856 = vmatpush3.bf16.msra.mxu1 %v2416_v20  ;;  %1745 = vmatprep.subr.bf16.mxu0 %v2417_v26  ;;  %v63_v16 = vld [vmem:[%s3624_s0 + $0x58] sm:$0xff]  ;;  %v2195_v18 = vpack.i.bf16 %v1684_v15, %v95_v14  ;;  %v97_v20 = vld [vmem:[%s3624_s0 + $0x168] sm:$0xff] }
  0x29   :  { %1980 = vxpose.xlu0.b32.cont [10/16] %v1979_v59, 128  ;;  %1857 = vmatprep.subr.bf16.mxu1 %v2417_v26  ;;  %v2299_v59 = vpack.i.bf16 %v1644_v57, %v55_v56  ;;  %v1652_v17 = vld [vmem:[%s3624_s0 + $0x258] sm:$0xff]  ;;  %v1690_v33 = vld [vmem:[%s3624_s0 + $0x388] sm:$0xff] }
  0x2a   :  { %v99_v26 = vld [vmem:[%s3624_s0 + $0x178] sm:$0xff]  ;;  %v1658_v35 = vld [vmem:[%s3624_s0 + $0x288] sm:$0xff]  ;;  %v2201_v36 = vpack.i.bf16 %v1690_v33, %v101_v32 }
  0x2b   :  { %2092 = vxpose.xlu1.b32.cont [10/16] %v2091_v63, 128  ;;  %1746 = vmatpush3.bf16.msra.mxu0 %v2418_v30  ;;  %v1646_v63 = vld [vmem:[%s3624_s0 + $0x228] sm:$0xff]  ;;  %v67_v28 = vld [vmem:[%s3624_s0 + $0x78] sm:$0xff] }
  0x2c   :  { %1858 = vmatpush3.bf16.msra.mxu1 %v2418_v30  ;;  %1747 = vmatprep.subr.bf16.mxu0 %v2419_v34  ;;  %v2301_v1 = vpack.i.bf16 %v1646_v63, %v57_v62  ;;  %v1656_v29 = vld [vmem:[%s3624_s0 + $0x278] sm:$0xff]  ;;  %v73_v46 = vld [vmem:[%s3624_s0 + $0xa8] sm:$0xff] }
  0x2d   :  { %1982 = vxpose.xlu0.b32.cont [11/16] %v1981_v3, 128  ;;  %1859 = vmatprep.subr.bf16.mxu1 %v2419_v34  ;;  %v1680_v3 = vld [vmem:[%s3624_s0 + $0x338] sm:$0xff]  ;;  %v69_v34 = vld [vmem:[%s3624_s0 + $0x88] sm:$0xff] }
  0x2e   :  { %v2191_v6 = vpack.i.bf16 %v1680_v3, %v91_v2  ;;  %v103_v38 = vld [vmem:[%s3624_s0 + $0x198] sm:$0xff]  ;;  %v1662_v47 = vld [vmem:[%s3624_s0 + $0x2a8] sm:$0xff] }
  0x2f   :  { %2094 = vxpose.xlu1.b32.cont [11/16] %v2093_v5, 128  ;;  %1748 = vmatpush3.bf16.msra.mxu0 %v2420_v39  ;;  %v1648_v5 = vld [vmem:[%s3624_s0 + $0x238] sm:$0xff]  ;;  %v2317_v49 = vpack.i.bf16 %v1662_v47, %v73_v46  ;;  %v109_v56 = vld [vmem:[%s3624_s0 + $0x1c8] sm:$0xff] }
  0x30   :  { %1860 = vmatpush3.bf16.msra.mxu1 %v2420_v39  ;;  %1749 = vmatprep.subr.bf16.mxu0 %v2421_v42  ;;  %v2303_v7 = vpack.i.bf16 %v1648_v5, %v59_v4  ;;  %v1692_v39 = vld [vmem:[%s3624_s0 + $0x398] sm:$0xff]  ;;  %v1698_v57 = vld [vmem:[%s3624_s0 + $0x3c8] sm:$0xff] }
  0x31   :  { %1984 = vxpose.xlu0.b32.cont [12/16] %v1983_v11, 128  ;;  %1861 = vmatprep.subr.bf16.mxu1 %v2421_v42  ;;  %v1650_v11 = vld [vmem:[%s3624_s0 + $0x248] sm:$0xff]  ;;  %v1660_v41 = vld [vmem:[%s3624_s0 + $0x298] sm:$0xff]  ;;  %v2203_v42 = vpack.i.bf16 %v1692_v39, %v103_v38  ;;  %v2209_v60 = vpack.i.bf16 %v1698_v57, %v109_v56 }
  0x32   :  { %v111_v62 = vld [vmem:[%s3624_s0 + $0x1d8] sm:$0xff]  ;;  %v113_v4 = vld [vmem:[%s3624_s0 + $0x1e8] sm:$0xff] }
  0x33   :  { %2096 = vxpose.xlu1.b32.cont [12/16] %v2095_v13, 128  ;;  %1750 = vmatpush3.bf16.msra.mxu0 %v2422_v44  ;;  %v2305_v13 = vpack.i.bf16 %v1650_v11, %v61_v10  ;;  %v1700_v63 = vld [vmem:[%s3624_s0 + $0x3d8] sm:$0xff]  ;;  %v1702_v5 = vld [vmem:[%s3624_s0 + $0x3e8] sm:$0xff] }
  0x34   :  { %1862 = vmatpush3.bf16.msra.mxu1 %v2422_v44  ;;  %1751 = vmatprep.subr.bf16.mxu0 %v2423_v50  ;;  %v105_v44 = vld [vmem:[%s3624_s0 + $0x1a8] sm:$0xff]  ;;  %v2211_v2 = vpack.i.bf16 %v1700_v63, %v111_v62  ;;  %v2213_v8 = vpack.i.bf16 %v1702_v5, %v113_v4  ;;  %v115_v10 = vld [vmem:[%s3624_s0 + $0x1f8] sm:$0xff] }
  0x35   :  { %1986 = vxpose.xlu0.b32.cont [13/16] %v1985_v19, 128  ;;  %1863 = vmatprep.subr.bf16.mxu1 %v2423_v50  ;;  %v2307_v19 = vpack.i.bf16 %v1652_v17, %v63_v16  ;;  %v107_v50 = vld [vmem:[%s3624_s0 + $0x1b8] sm:$0xff] }
  0x36   :  { %v1704_v11 = vld [vmem:[%s3624_s0 + $0x3f8] sm:$0xff] }
  0x37   :  { %2098 = vxpose.xlu1.b32.cont [13/16] %v2097_v21, 128  ;;  %1752 = vmatpush3.bf16.msra.mxu0 %v2424_v52  ;;  %v1686_v21 = vld [vmem:[%s3624_s0 + $0x368] sm:$0xff]  ;;  %v2215_v14 = vpack.i.bf16 %v1704_v11, %v115_v10 }
  0x38   :  { %1864 = vmatpush3.bf16.msra.mxu1 %v2424_v52  ;;  %v2197_v24 = vpack.i.bf16 %v1686_v21, %v97_v20  ;;  %v75_v52 = vld [vmem:[%s3624_s0 + $0xb8] sm:$0xff] }
  0x39   :  { %1988 = vxpose.xlu0.b32.cont [14/16] %v1987_v27, 128  ;;  %v1688_v27 = vld [vmem:[%s3624_s0 + $0x378] sm:$0xff] }
  0x3a   :  { %v2199_v30 = vpack.i.bf16 %v1688_v27, %v99_v26 }
  0x3b   :  { %2100 = vxpose.xlu1.b32.cont [14/16] %v2099_v31, 128  ;;  %v2311_v31 = vpack.i.bf16 %v1656_v29, %v67_v28 }
  0x3d   :  { %1990 = vxpose.xlu0.b32.cont [15/16] %v1989_v37, 128  ;;  %v2313_v37 = vpack.i.bf16 %v1658_v35, %v69_v34 }
  0x3f   :  { %2102 = vxpose.xlu1.b32.cont [15/16] %v2101_v40, 128  ;;  %v71_v40 = vld [vmem:[%s3624_s0 + $0x98] sm:$0xff] }
  0x41   :  { %1992 = vxpose.xlu0.b32.end [16/16] %v1991_v43, 128  ;;  %v2315_v43 = vpack.i.bf16 %v1660_v41, %v71_v40 }
  0x43   :  { %2104 = vxpose.xlu1.b32.end [16/16] %v2103_v45, 128  ;;  %v1694_v45 = vld [vmem:[%s3624_s0 + $0x3a8] sm:$0xff] }
  0x44   :  { %v2205_v48 = vpack.i.bf16 %v1694_v45, %v105_v44 }
  0x45   :  { %2186 = vxpose.xlu0.b32.start [1/16] %v2185_v51, 128  ;;  %v1696_v51 = vld [vmem:[%s3624_s0 + $0x3b8] sm:$0xff] }
  0x46   :  { %v2207_v54 = vpack.i.bf16 %v1696_v51, %v107_v50 }
  0x47   :  { %2298 = vxpose.xlu1.b32.start [1/16] %v2297_v53, 128  ;;  %v1664_v53 = vld [vmem:[%s3624_s0 + $0x2b8] sm:$0xff] }
  0x48   :  { %v2319_v55 = vpack.i.bf16 %v1664_v53, %v75_v52 }
  0x49   :  { %2188 = vxpose.xlu0.b32.cont [2/16] %v2187_v58, 128  ;;  %v77_v58 = vld [vmem:[%s3624_s0 + $0xc8] sm:$0xff] }
  0x4b   :  { %2300 = vxpose.xlu1.b32.cont [2/16] %v2299_v59, 128  ;;  %v1666_v59 = vld [vmem:[%s3624_s0 + $0x2c8] sm:$0xff] }
  0x4c   :  { %v2321_v61 = vpack.i.bf16 %v1666_v59, %v77_v58 }
  0x4d   :  { %2190 = vxpose.xlu0.b32.cont [3/16] %v2189_v0, 128  ;;  %v79_v0 = vld [vmem:[%s3624_s0 + $0xd8] sm:$0xff] }
  0x4f   :  { %2302 = vxpose.xlu1.b32.cont [3/16] %v2301_v1, 128  ;;  %v1668_v1 = vld [vmem:[%s3624_s0 + $0x2d8] sm:$0xff] }
  0x50   :  { %v2323_v3 = vpack.i.bf16 %v1668_v1, %v79_v0 }
  0x51   :  { %2192 = vxpose.xlu0.b32.cont [4/16] %v2191_v6, 128  ;;  %v81_v6 = vld [vmem:[%s3624_s0 + $0xe8] sm:$0xff] }
  0x53   :  { %2304 = vxpose.xlu1.b32.cont [4/16] %v2303_v7, 128  ;;  %v1670_v7 = vld [vmem:[%s3624_s0 + $0x2e8] sm:$0xff] }
  0x54   :  { %v2325_v9 = vpack.i.bf16 %v1670_v7, %v81_v6 }
  0x55   :  { %2194 = vxpose.xlu0.b32.cont [5/16] %v2193_v12, 128  ;;  %v83_v12 = vld [vmem:[%s3624_s0 + $0xf8] sm:$0xff] }
  0x57   :  { %2306 = vxpose.xlu1.b32.cont [5/16] %v2305_v13, 128  ;;  %v1672_v13 = vld [vmem:[%s3624_s0 + $0x2f8] sm:$0xff] }
  0x58   :  { %v2327_v15 = vpack.i.bf16 %v1672_v13, %v83_v12 }
  0x59   :  { %2196 = vxpose.xlu0.b32.cont [6/16] %v2195_v18, 128 }
  0x5b   :  { %2308 = vxpose.xlu1.b32.cont [6/16] %v2307_v19, 128 }
  0x5d   :  { %2198 = vxpose.xlu0.b32.cont [7/16] %v2197_v24, 128 }
  0x5f   :  { %2310 = vxpose.xlu1.b32.cont [7/16] %v2309_v25, 128 }
  0x61   :  { %2200 = vxpose.xlu0.b32.cont [8/16] %v2199_v30, 128 }
  0x63   :  { %2312 = vxpose.xlu1.b32.cont [8/16] %v2311_v31, 128 }
  0x65   :  { %2202 = vxpose.xlu0.b32.cont [9/16] %v2201_v36, 128 }
  0x67   :  { %2314 = vxpose.xlu1.b32.cont [9/16] %v2313_v37, 128 }
  0x69   :  { %2204 = vxpose.xlu0.b32.cont [10/16] %v2203_v42, 128 }
  0x6b   :  { %2316 = vxpose.xlu1.b32.cont [10/16] %v2315_v43, 128 }
  0x6d   :  { %2206 = vxpose.xlu0.b32.cont [11/16] %v2205_v48, 128 }
  0x6f   :  { %2318 = vxpose.xlu1.b32.cont [11/16] %v2317_v49, 128 }
  0x71   :  { %2208 = vxpose.xlu0.b32.cont [12/16] %v2207_v54, 128 }
  0x73   :  { %2320 = vxpose.xlu1.b32.cont [12/16] %v2319_v55, 128 }
  0x75   :  { %2210 = vxpose.xlu0.b32.cont [13/16] %v2209_v60, 128 }
  0x77   :  { %2322 = vxpose.xlu1.b32.cont [13/16] %v2321_v61, 128 }
  0x79   :  { %2212 = vxpose.xlu0.b32.cont [14/16] %v2211_v2, 128 }
  0x7b   :  { %2324 = vxpose.xlu1.b32.cont [14/16] %v2323_v3, 128 }
  0x7d   :  { %2214 = vxpose.xlu0.b32.cont [15/16] %v2213_v8, 128 }
  0x7f   :  { %2326 = vxpose.xlu1.b32.cont [15/16] %v2325_v9, 128 }
  0x81   :  { %2216 = vxpose.xlu0.b32.end [16/16] %v2215_v14, 128 }
  0x83   :  { %2328 = vxpose.xlu1.b32.end [16/16] %v2327_v15, 128 }
  0x85   :  { %v1993_v16 = vpop.trf.xlu0 }
  0x86   :  { %v1994_v21 = vunpack.i.l.bf16 %v1993_v16  ;;  %v1997_v22 = vunpack.i.h.bf16 %v1993_v16 }
  0x87   :  { %v2105_v17 = vpop.trf.xlu1 }
  0x88   :  { %v2109_v18 = vunpack.i.h.bf16 %v2105_v17  ;;  %v2106_v19 = vunpack.i.l.bf16 %v2105_v17 }
  0x89   :  { %v1998_v20 = vpop.trf.xlu0 }
  0x8a   :  { %v1999_v24 = vunpack.i.l.bf16 %v1998_v20  ;;  %v2002_v25 = vunpack.i.h.bf16 %v1998_v20 }
  0x8b   :  { %v2110_v23 = vpop.trf.xlu1 }
  0x8c   :  { %v2114_v26 = vunpack.i.h.bf16 %v2110_v23  ;;  %v2111_v27 = vunpack.i.l.bf16 %v2110_v23  ;;  %v245_v28 = vpack.c.bf16 %v1999_v24, %v1994_v21  ;;  %v1066_v29 = vpack.c.bf16 %v2002_v25, %v1997_v22 }
  0x8d   :  { %v2003_v30 = vpop.trf.xlu0 }
  0x8e   :  { %v244_v31 = vpack.c.bf16 %v2111_v27, %v2106_v19  ;;  %v1065_v32 = vpack.c.bf16 %v2114_v26, %v2109_v18  ;;  %404 = vmatprep.mubr.bf16.mxu0 %v245_v28  ;;  %1129 = vmatprep.mubr.bf16.mxu1 %v1066_v29  ;;  %v2007_v34 = vunpack.i.h.bf16 %v2003_v30  ;;  %v2004_v35 = vunpack.i.l.bf16 %v2003_v30 }
  0x8f   :  { %v2115_v33 = vpop.trf.xlu1 }
  0x90   :  { %405 = vmatmul.mubr.bf16.vlgmr.msra.gmra.mrb[0].mxu0 %v244_v31  ;;  %1130 = vmatmul.mubr.bf16.vlgmr.msra.gmra.mrb[0].mxu1 %v1065_v32  ;;  %v2119_v36 = vunpack.i.h.bf16 %v2115_v33  ;;  %v2116_v37 = vunpack.i.l.bf16 %v2115_v33 }
  0x91   :  { %v2008_v38 = vpop.trf.xlu0 }
  0x92   :  { %v2012_v39 = vunpack.i.h.bf16 %v2008_v38  ;;  %v2009_v40 = vunpack.i.l.bf16 %v2008_v38 }
  0x93   :  { %v2120_v41 = vpop.trf.xlu1 }
  0x94   :  { %v2124_v42 = vunpack.i.h.bf16 %v2120_v41  ;;  %v2121_v43 = vunpack.i.l.bf16 %v2120_v41  ;;  %v247_v44 = vpack.c.bf16 %v2009_v40, %v2004_v35  ;;  %v1068_v45 = vpack.c.bf16 %v2012_v39, %v2007_v34 }
  0x95   :  { %v2013_v46 = vpop.trf.xlu0 }
  0x96   :  { %v246_v47 = vpack.c.bf16 %v2121_v43, %v2116_v37  ;;  %v1067_v48 = vpack.c.bf16 %v2124_v42, %v2119_v36  ;;  %412 = vmatprep.mubr.bf16.mxu0 %v247_v44  ;;  %1137 = vmatprep.mubr.bf16.mxu1 %v1068_v45  ;;  %v2017_v50 = vunpack.i.h.bf16 %v2013_v46  ;;  %v2014_v51 = vunpack.i.l.bf16 %v2013_v46 }
  0x97   :  { %v2125_v49 = vpop.trf.xlu1 }
  0x98   :  { %413 = vmatmul.mubr.bf16.gmra.mrb[4].mxu0 %v246_v47  ;;  %1138 = vmatmul.mubr.bf16.gmra.mrb[4].mxu1 %v1067_v48  ;;  %v2129_v52 = vunpack.i.h.bf16 %v2125_v49  ;;  %v2126_v53 = vunpack.i.l.bf16 %v2125_v49 }
  0x99   :  { %v2018_v54 = vpop.trf.xlu0 }
  0x9a   :  { %v2022_v55 = vunpack.i.h.bf16 %v2018_v54  ;;  %v2019_v56 = vunpack.i.l.bf16 %v2018_v54 }
  0x9b   :  { %v2130_v57 = vpop.trf.xlu1 }
  0x9c   :  { %v2134_v58 = vunpack.i.h.bf16 %v2130_v57  ;;  %v2131_v59 = vunpack.i.l.bf16 %v2130_v57  ;;  %v249_v60 = vpack.c.bf16 %v2019_v56, %v2014_v51  ;;  %v1070_v61 = vpack.c.bf16 %v2022_v55, %v2017_v50 }
  0x9d   :  { %v2023_v62 = vpop.trf.xlu0 }
  0x9e   :  { %v248_v63 = vpack.c.bf16 %v2131_v59, %v2126_v53  ;;  %v1069_v0 = vpack.c.bf16 %v2134_v58, %v2129_v52  ;;  %420 = vmatprep.mubr.bf16.mxu0 %v249_v60  ;;  %1145 = vmatprep.mubr.bf16.mxu1 %v1070_v61  ;;  %v2027_v2 = vunpack.i.h.bf16 %v2023_v62  ;;  %v2024_v3 = vunpack.i.l.bf16 %v2023_v62 }
  0x9f   :  { %v2135_v1 = vpop.trf.xlu1 }
  0xa0   :  { %421 = vmatmul.mubr.bf16.gmra.mrb[8].mxu0 %v248_v63  ;;  %1146 = vmatmul.mubr.bf16.gmra.mrb[8].mxu1 %v1069_v0  ;;  %v2139_v4 = vunpack.i.h.bf16 %v2135_v1  ;;  %v2136_v5 = vunpack.i.l.bf16 %v2135_v1 }
  0xa1   :  { %v2028_v6 = vpop.trf.xlu0 }
  0xa2   :  { %v2032_v7 = vunpack.i.h.bf16 %v2028_v6  ;;  %v2029_v8 = vunpack.i.l.bf16 %v2028_v6 }
  0xa3   :  { %v2140_v9 = vpop.trf.xlu1 }
  0xa4   :  { %v2144_v10 = vunpack.i.h.bf16 %v2140_v9  ;;  %v2141_v11 = vunpack.i.l.bf16 %v2140_v9  ;;  %v251_v12 = vpack.c.bf16 %v2029_v8, %v2024_v3  ;;  %v1072_v13 = vpack.c.bf16 %v2032_v7, %v2027_v2 }
  0xa5   :  { %v2033_v14 = vpop.trf.xlu0 }
  0xa6   :  { %v250_v15 = vpack.c.bf16 %v2141_v11, %v2136_v5  ;;  %v1071_v16 = vpack.c.bf16 %v2144_v10, %v2139_v4  ;;  %428 = vmatprep.mubr.bf16.mxu0 %v251_v12  ;;  %1153 = vmatprep.mubr.bf16.mxu1 %v1072_v13  ;;  %v2037_v18 = vunpack.i.h.bf16 %v2033_v14  ;;  %v2034_v19 = vunpack.i.l.bf16 %v2033_v14 }
  0xa7   :  { %v2145_v17 = vpop.trf.xlu1 }
  0xa8   :  { %429 = vmatmul.mubr.bf16.gmra.mrb[12].mxu0 %v250_v15  ;;  %1154 = vmatmul.mubr.bf16.gmra.mrb[12].mxu1 %v1071_v16  ;;  %v2149_v20 = vunpack.i.h.bf16 %v2145_v17  ;;  %v2146_v21 = vunpack.i.l.bf16 %v2145_v17 }
  0xa9   :  { %v2038_v22 = vpop.trf.xlu0 }
  0xaa   :  { %v2042_v23 = vunpack.i.h.bf16 %v2038_v22  ;;  %v2039_v24 = vunpack.i.l.bf16 %v2038_v22 }
  0xab   :  { %v2150_v25 = vpop.trf.xlu1 }
  0xac   :  { %v2154_v26 = vunpack.i.h.bf16 %v2150_v25  ;;  %v2151_v27 = vunpack.i.l.bf16 %v2150_v25  ;;  %v253_v28 = vpack.c.bf16 %v2039_v24, %v2034_v19  ;;  %v1074_v29 = vpack.c.bf16 %v2042_v23, %v2037_v18 }
  0xad   :  { %v2043_v30 = vpop.trf.xlu0 }
  0xae   :  { %v252_v31 = vpack.c.bf16 %v2151_v27, %v2146_v21  ;;  %v1073_v32 = vpack.c.bf16 %v2154_v26, %v2149_v20  ;;  %436 = vmatprep.mubr.bf16.mxu0 %v253_v28  ;;  %1161 = vmatprep.mubr.bf16.mxu1 %v1074_v29  ;;  %v2047_v34 = vunpack.i.h.bf16 %v2043_v30  ;;  %v2044_v35 = vunpack.i.l.bf16 %v2043_v30 }
  0xaf   :  { %v2155_v33 = vpop.trf.xlu1 }
  0xb0   :  { %437 = vmatmul.mubr.bf16.gmra.mrb[16].mxu0 %v252_v31  ;;  %1162 = vmatmul.mubr.bf16.gmra.mrb[16].mxu1 %v1073_v32  ;;  %v2159_v36 = vunpack.i.h.bf16 %v2155_v33  ;;  %v2156_v37 = vunpack.i.l.bf16 %v2155_v33 }
  0xb1   :  { %v2048_v38 = vpop.trf.xlu0 }
  0xb2   :  { %v2052_v39 = vunpack.i.h.bf16 %v2048_v38  ;;  %v2049_v40 = vunpack.i.l.bf16 %v2048_v38 }
  0xb3   :  { %v2160_v41 = vpop.trf.xlu1 }
  0xb4   :  { %v2164_v42 = vunpack.i.h.bf16 %v2160_v41  ;;  %v2161_v43 = vunpack.i.l.bf16 %v2160_v41  ;;  %v255_v44 = vpack.c.bf16 %v2049_v40, %v2044_v35  ;;  %v1076_v45 = vpack.c.bf16 %v2052_v39, %v2047_v34 }
  0xb5   :  { %v2053_v46 = vpop.trf.xlu0 }
  0xb6   :  { %v254_v47 = vpack.c.bf16 %v2161_v43, %v2156_v37  ;;  %v1075_v48 = vpack.c.bf16 %v2164_v42, %v2159_v36  ;;  %444 = vmatprep.mubr.bf16.mxu0 %v255_v44  ;;  %1169 = vmatprep.mubr.bf16.mxu1 %v1076_v45  ;;  %v2057_v50 = vunpack.i.h.bf16 %v2053_v46  ;;  %v2054_v51 = vunpack.i.l.bf16 %v2053_v46 }
  0xb7   :  { %v2165_v49 = vpop.trf.xlu1 }
  0xb8   :  { %445 = vmatmul.mubr.bf16.gmra.mrb[20].mxu0 %v254_v47  ;;  %1170 = vmatmul.mubr.bf16.gmra.mrb[20].mxu1 %v1075_v48  ;;  %v2169_v52 = vunpack.i.h.bf16 %v2165_v49  ;;  %v2166_v53 = vunpack.i.l.bf16 %v2165_v49 }
  0xb9   :  { %v2058_v54 = vpop.trf.xlu0 }
  0xba   :  { %v2062_v55 = vunpack.i.h.bf16 %v2058_v54  ;;  %v2059_v56 = vunpack.i.l.bf16 %v2058_v54 }
  0xbb   :  { %v2170_v57 = vpop.trf.xlu1 }
  0xbc   :  { %v2174_v58 = vunpack.i.h.bf16 %v2170_v57  ;;  %v2171_v59 = vunpack.i.l.bf16 %v2170_v57  ;;  %v257_v60 = vpack.c.bf16 %v2059_v56, %v2054_v51  ;;  %v1078_v61 = vpack.c.bf16 %v2062_v55, %v2057_v50 }
  0xbd   :  { %v2063_v62 = vpop.trf.xlu0 }
  0xbe   :  { %v256_v63 = vpack.c.bf16 %v2171_v59, %v2166_v53  ;;  %v1077_v0 = vpack.c.bf16 %v2174_v58, %v2169_v52  ;;  %452 = vmatprep.mubr.bf16.mxu0 %v257_v60  ;;  %1177 = vmatprep.mubr.bf16.mxu1 %v1078_v61  ;;  %v2067_v2 = vunpack.i.h.bf16 %v2063_v62  ;;  %v2064_v3 = vunpack.i.l.bf16 %v2063_v62 }
  0xbf   :  { %v2175_v1 = vpop.trf.xlu1 }
  0xc0   :  { %453 = vmatmul.mubr.bf16.gmra.mrb[24].mxu0 %v256_v63  ;;  %1178 = vmatmul.mubr.bf16.gmra.mrb[24].mxu1 %v1077_v0  ;;  %v2179_v4 = vunpack.i.h.bf16 %v2175_v1  ;;  %v2176_v5 = vunpack.i.l.bf16 %v2175_v1 }
  0xc1   :  { %v2068_v6 = vpop.trf.xlu0 }
  0xc2   :  { %v2072_v7 = vunpack.i.h.bf16 %v2068_v6  ;;  %v2069_v8 = vunpack.i.l.bf16 %v2068_v6 }
  0xc3   :  { %v2180_v9 = vpop.trf.xlu1 }
  0xc4   :  { %v2184_v10 = vunpack.i.h.bf16 %v2180_v9  ;;  %v2181_v11 = vunpack.i.l.bf16 %v2180_v9  ;;  %v259_v12 = vpack.c.bf16 %v2069_v8, %v2064_v3  ;;  %v1080_v13 = vpack.c.bf16 %v2072_v7, %v2067_v2 }
  0xc5   :  { %v2217_v14 = vpop.trf.xlu0 }
  0xc6   :  { %v258_v15 = vpack.c.bf16 %v2181_v11, %v2176_v5  ;;  %v1079_v16 = vpack.c.bf16 %v2184_v10, %v2179_v4  ;;  %460 = vmatprep.mubr.bf16.mxu0 %v259_v12  ;;  %1185 = vmatprep.mubr.bf16.mxu1 %v1080_v13  ;;  %v2221_v18 = vunpack.i.h.bf16 %v2217_v14  ;;  %v2218_v19 = vunpack.i.l.bf16 %v2217_v14 }
  0xc7   :  { %v2329_v17 = vpop.trf.xlu1 }
  0xc8   :  { %461 = vmatmul.mubr.bf16.gmra.mrb[28].mxu0 %v258_v15  ;;  %1186 = vmatmul.mubr.bf16.gmra.mrb[28].mxu1 %v1079_v16  ;;  %v2333_v20 = vunpack.i.h.bf16 %v2329_v17  ;;  %v2330_v21 = vunpack.i.l.bf16 %v2329_v17 }
  0xc9   :  { %v2222_v22 = vpop.trf.xlu0 }
  0xca   :  { %v2226_v23 = vunpack.i.h.bf16 %v2222_v22  ;;  %v2223_v24 = vunpack.i.l.bf16 %v2222_v22 }
  0xcb   :  { %v2334_v25 = vpop.trf.xlu1 }
  0xcc   :  { %v2338_v26 = vunpack.i.h.bf16 %v2334_v25  ;;  %v2335_v27 = vunpack.i.l.bf16 %v2334_v25  ;;  %v261_v28 = vpack.c.bf16 %v2223_v24, %v2218_v19  ;;  %v1082_v29 = vpack.c.bf16 %v2226_v23, %v2221_v18 }
  0xcd   :  { %v2227_v30 = vpop.trf.xlu0 }
  0xce   :  { %v260_v31 = vpack.c.bf16 %v2335_v27, %v2330_v21  ;;  %v1081_v32 = vpack.c.bf16 %v2338_v26, %v2333_v20  ;;  %468 = vmatprep.mubr.bf16.mxu0 %v261_v28  ;;  %1193 = vmatprep.mubr.bf16.mxu1 %v1082_v29  ;;  %v2231_v34 = vunpack.i.h.bf16 %v2227_v30  ;;  %v2228_v35 = vunpack.i.l.bf16 %v2227_v30 }
  0xcf   :  { %v2339_v33 = vpop.trf.xlu1 }
  0xd0   :  { %469 = vmatmul.mubr.bf16.gmra.mrb[32].mxu0 %v260_v31  ;;  %1194 = vmatmul.mubr.bf16.gmra.mrb[32].mxu1 %v1081_v32  ;;  %v2343_v36 = vunpack.i.h.bf16 %v2339_v33  ;;  %v2340_v37 = vunpack.i.l.bf16 %v2339_v33 }
  0xd1   :  { %v2232_v38 = vpop.trf.xlu0 }
  0xd2   :  { %v2236_v39 = vunpack.i.h.bf16 %v2232_v38  ;;  %v2233_v40 = vunpack.i.l.bf16 %v2232_v38 }
  0xd3   :  { %v2344_v41 = vpop.trf.xlu1 }
  0xd4   :  { %v2348_v42 = vunpack.i.h.bf16 %v2344_v41  ;;  %v2345_v43 = vunpack.i.l.bf16 %v2344_v41  ;;  %v263_v44 = vpack.c.bf16 %v2233_v40, %v2228_v35  ;;  %v1084_v45 = vpack.c.bf16 %v2236_v39, %v2231_v34 }
  0xd5   :  { %v2237_v46 = vpop.trf.xlu0 }
  0xd6   :  { %v262_v47 = vpack.c.bf16 %v2345_v43, %v2340_v37  ;;  %v1083_v48 = vpack.c.bf16 %v2348_v42, %v2343_v36  ;;  %476 = vmatprep.mubr.bf16.mxu0 %v263_v44  ;;  %1201 = vmatprep.mubr.bf16.mxu1 %v1084_v45  ;;  %v2241_v50 = vunpack.i.h.bf16 %v2237_v46  ;;  %v2238_v51 = vunpack.i.l.bf16 %v2237_v46 }
  0xd7   :  { %v2349_v49 = vpop.trf.xlu1 }
  0xd8   :  { %477 = vmatmul.mubr.bf16.gmra.mrb[36].mxu0 %v262_v47  ;;  %1202 = vmatmul.mubr.bf16.gmra.mrb[36].mxu1 %v1083_v48  ;;  %v2353_v52 = vunpack.i.h.bf16 %v2349_v49  ;;  %v2350_v53 = vunpack.i.l.bf16 %v2349_v49 }
  0xd9   :  { %v2242_v54 = vpop.trf.xlu0 }
  0xda   :  { %v2246_v55 = vunpack.i.h.bf16 %v2242_v54  ;;  %v2243_v56 = vunpack.i.l.bf16 %v2242_v54 }
  0xdb   :  { %v2354_v57 = vpop.trf.xlu1 }
  0xdc   :  { %v2358_v58 = vunpack.i.h.bf16 %v2354_v57  ;;  %v2355_v59 = vunpack.i.l.bf16 %v2354_v57  ;;  %v265_v60 = vpack.c.bf16 %v2243_v56, %v2238_v51  ;;  %v1086_v61 = vpack.c.bf16 %v2246_v55, %v2241_v50 }
  0xdd   :  { %v2247_v62 = vpop.trf.xlu0 }
  0xde   :  { %v264_v63 = vpack.c.bf16 %v2355_v59, %v2350_v53  ;;  %v1085_v0 = vpack.c.bf16 %v2358_v58, %v2353_v52  ;;  %484 = vmatprep.mubr.bf16.mxu0 %v265_v60  ;;  %1209 = vmatprep.mubr.bf16.mxu1 %v1086_v61  ;;  %v2251_v2 = vunpack.i.h.bf16 %v2247_v62  ;;  %v2248_v3 = vunpack.i.l.bf16 %v2247_v62 }
  0xdf   :  { %v2359_v1 = vpop.trf.xlu1 }
  0xe0   :  { %485 = vmatmul.mubr.bf16.gmra.mrb[40].mxu0 %v264_v63  ;;  %1210 = vmatmul.mubr.bf16.gmra.mrb[40].mxu1 %v1085_v0  ;;  %v2363_v4 = vunpack.i.h.bf16 %v2359_v1  ;;  %v2360_v5 = vunpack.i.l.bf16 %v2359_v1 }
  0xe1   :  { %v2252_v6 = vpop.trf.xlu0 }
  0xe2   :  { %v2256_v7 = vunpack.i.h.bf16 %v2252_v6  ;;  %v2253_v8 = vunpack.i.l.bf16 %v2252_v6 }
  0xe3   :  { %v2364_v9 = vpop.trf.xlu1 }
  0xe4   :  { %v2368_v10 = vunpack.i.h.bf16 %v2364_v9  ;;  %v2365_v11 = vunpack.i.l.bf16 %v2364_v9  ;;  %v267_v12 = vpack.c.bf16 %v2253_v8, %v2248_v3  ;;  %v1088_v13 = vpack.c.bf16 %v2256_v7, %v2251_v2 }
  0xe5   :  { %v2257_v14 = vpop.trf.xlu0 }
  0xe6   :  { %v266_v15 = vpack.c.bf16 %v2365_v11, %v2360_v5  ;;  %v1087_v16 = vpack.c.bf16 %v2368_v10, %v2363_v4  ;;  %492 = vmatprep.mubr.bf16.mxu0 %v267_v12  ;;  %1217 = vmatprep.mubr.bf16.mxu1 %v1088_v13  ;;  %v2261_v18 = vunpack.i.h.bf16 %v2257_v14  ;;  %v2258_v19 = vunpack.i.l.bf16 %v2257_v14 }
  0xe7   :  { %v2369_v17 = vpop.trf.xlu1 }
  0xe8   :  { %493 = vmatmul.mubr.bf16.gmra.mrb[44].mxu0 %v266_v15  ;;  %1218 = vmatmul.mubr.bf16.gmra.mrb[44].mxu1 %v1087_v16  ;;  %v2373_v20 = vunpack.i.h.bf16 %v2369_v17  ;;  %v2370_v21 = vunpack.i.l.bf16 %v2369_v17 }
  0xe9   :  { %v2262_v22 = vpop.trf.xlu0 }
  0xea   :  { %v2266_v23 = vunpack.i.h.bf16 %v2262_v22  ;;  %v2263_v24 = vunpack.i.l.bf16 %v2262_v22 }
  0xeb   :  { %v2374_v25 = vpop.trf.xlu1 }
  0xec   :  { %v2378_v26 = vunpack.i.h.bf16 %v2374_v25  ;;  %v2375_v27 = vunpack.i.l.bf16 %v2374_v25  ;;  %v269_v28 = vpack.c.bf16 %v2263_v24, %v2258_v19  ;;  %v1090_v29 = vpack.c.bf16 %v2266_v23, %v2261_v18  ;;  %v3143_v18 = vld [vmem:[%s3626_s2] ss:$0 sm:$0xff] }
  0xed   :  { %v2267_v30 = vpop.trf.xlu0  ;;  %v3148_v25 = vld [vmem:[%s3627_s3] ss:$0 sm:$0xff] }
  0xee   :  { %v268_v31 = vpack.c.bf16 %v2375_v27, %v2370_v21  ;;  %v1089_v32 = vpack.c.bf16 %v2378_v26, %v2373_v20  ;;  %500 = vmatprep.mubr.bf16.mxu0 %v269_v28  ;;  %1225 = vmatprep.mubr.bf16.mxu1 %v1090_v29  ;;  %v2271_v34 = vunpack.i.h.bf16 %v2267_v30  ;;  %v2268_v35 = vunpack.i.l.bf16 %v2267_v30 }
  0xef   :  { %v2379_v33 = vpop.trf.xlu1 }
  0xf0   :  { %501 = vmatmul.mubr.bf16.gmra.mrb[48].mxu0 %v268_v31  ;;  %1226 = vmatmul.mubr.bf16.gmra.mrb[48].mxu1 %v1089_v32  ;;  %v2383_v36 = vunpack.i.h.bf16 %v2379_v33  ;;  %v2380_v37 = vunpack.i.l.bf16 %v2379_v33 }
  0xf1   :  { %v2272_v38 = vpop.trf.xlu0 }
  0xf2   :  { %v2276_v39 = vunpack.i.h.bf16 %v2272_v38  ;;  %v2273_v40 = vunpack.i.l.bf16 %v2272_v38 }
  0xf3   :  { %v2384_v41 = vpop.trf.xlu1 }
  0xf4   :  { %v2388_v42 = vunpack.i.h.bf16 %v2384_v41  ;;  %v2385_v43 = vunpack.i.l.bf16 %v2384_v41  ;;  %v271_v44 = vpack.c.bf16 %v2273_v40, %v2268_v35  ;;  %v1092_v45 = vpack.c.bf16 %v2276_v39, %v2271_v34 }
  0xf5   :  { %v2277_v46 = vpop.trf.xlu0 }
  0xf6   :  { %v270_v47 = vpack.c.bf16 %v2385_v43, %v2380_v37  ;;  %v1091_v48 = vpack.c.bf16 %v2388_v42, %v2383_v36  ;;  %508 = vmatprep.mubr.bf16.mxu0 %v271_v44  ;;  %1233 = vmatprep.mubr.bf16.mxu1 %v1092_v45  ;;  %v2281_v50 = vunpack.i.h.bf16 %v2277_v46  ;;  %v2278_v51 = vunpack.i.l.bf16 %v2277_v46 }
  0xf7   :  { %v2389_v49 = vpop.trf.xlu1 }
  0xf8   :  { %509 = vmatmul.mubr.bf16.gmra.mrb[52].mxu0 %v270_v47  ;;  %1234 = vmatmul.mubr.bf16.gmra.mrb[52].mxu1 %v1091_v48  ;;  %v2393_v52 = vunpack.i.h.bf16 %v2389_v49  ;;  %v2390_v53 = vunpack.i.l.bf16 %v2389_v49 }
  0xf9   :  { %v2282_v54 = vpop.trf.xlu0 }
  0xfa   :  { %v2286_v55 = vunpack.i.h.bf16 %v2282_v54  ;;  %v2283_v56 = vunpack.i.l.bf16 %v2282_v54 }
  0xfb   :  { %v2394_v57 = vpop.trf.xlu1 }
  0xfc   :  { %v2398_v58 = vunpack.i.h.bf16 %v2394_v57  ;;  %v2395_v59 = vunpack.i.l.bf16 %v2394_v57  ;;  %v273_v60 = vpack.c.bf16 %v2283_v56, %v2278_v51  ;;  %v1094_v61 = vpack.c.bf16 %v2286_v55, %v2281_v50 }
  0xfd   :  { %v2287_v62 = vpop.trf.xlu0 }
  0xfe   :  { %v272_v63 = vpack.c.bf16 %v2395_v59, %v2390_v53  ;;  %v1093_v0 = vpack.c.bf16 %v2398_v58, %v2393_v52  ;;  %516 = vmatprep.mubr.bf16.mxu0 %v273_v60  ;;  %1241 = vmatprep.mubr.bf16.mxu1 %v1094_v61  ;;  %v2291_v2 = vunpack.i.h.bf16 %v2287_v62  ;;  %v2288_v3 = vunpack.i.l.bf16 %v2287_v62 }
  0xff   :  { %v2399_v1 = vpop.trf.xlu1 }
 0x100   :  { %517 = vmatmul.mubr.bf16.gmra.mrb[56].mxu0 %v272_v63  ;;  %1242 = vmatmul.mubr.bf16.gmra.mrb[56].mxu1 %v1093_v0  ;;  %v2403_v4 = vunpack.i.h.bf16 %v2399_v1  ;;  %v2400_v5 = vunpack.i.l.bf16 %v2399_v1 }
 0x101   :  { %v2292_v6 = vpop.trf.xlu0 }
 0x102   :  { %v2296_v7 = vunpack.i.h.bf16 %v2292_v6  ;;  %v2293_v8 = vunpack.i.l.bf16 %v2292_v6 }
 0x103   :  { %v2404_v9 = vpop.trf.xlu1 }
 0x104   :  { %v2408_v10 = vunpack.i.h.bf16 %v2404_v9  ;;  %v2405_v11 = vunpack.i.l.bf16 %v2404_v9  ;;  %v275_v12 = vpack.c.bf16 %v2293_v8, %v2288_v3  ;;  %v1096_v13 = vpack.c.bf16 %v2296_v7, %v2291_v2 }
 0x106   :  { %v274_v14 = vpack.c.bf16 %v2405_v11, %v2400_v5  ;;  %v1095_v15 = vpack.c.bf16 %v2408_v10, %v2403_v4  ;;  %524 = vmatprep.mubr.bf16.mxu0 %v275_v12  ;;  %1249 = vmatprep.mubr.bf16.mxu1 %v1096_v13 }
 0x108   :  { %525 = vmatmul.mubr.bf16.gmra.mrb[60].mxu0 %v274_v14  ;;  %1250 = vmatmul.mubr.bf16.gmra.mrb[60].mxu1 %v1095_v15 }
 0x163   :  { %v1753_v16 = vpop.f32.mrb[0].mxu0  ;;  %v1865_v17 = vpop.f32.mrb[0].mxu1 }
 0x164   :  { %v1754_v19 = vpop.f32.mrb[1].mxu0  ;;  %v1866_v20 = vpop.f32.mrb[1].mxu1 }
 0x165   :  { %v1755_v21 = vadd.f32 %v1754_v19, %v1753_v16  ;;  %v1867_v22 = vadd.f32 %v1866_v20, %v1865_v17  ;;  %v1756_v23 = vpop.f32.mrb[2].mxu0  ;;  %v1868_v24 = vpop.f32.mrb[2].mxu1 }
 0x166   :  { %v1757_v26 = vpop.f32.mrb[3].mxu0  ;;  %v1869_v27 = vpop.f32.mrb[3].mxu1 }
 0x167   :  { %v539_v28 = vmul.f32 %v1755_v21, %v3143_v18  ;;  %v1258_v29 = vmul.f32 %v1867_v22, %v3143_v18  ;;  %v1758_v30 = vadd.f32 %v1757_v26, %v1756_v23  ;;  %v1870_v31 = vadd.f32 %v1869_v27, %v1868_v24 }
 0x169   :  { %v3153_v32 = vadd.f32 %v3148_v25, %v539_v28  ;;  %v3156_v33 = vadd.f32 %v3148_v25, %v1258_v29  ;;  %v540_v34 = vmul.f32 %v1758_v30, %v3143_v18  ;;  %v1259_v35 = vmul.f32 %v1870_v31, %v3143_v18 }
 0x16b   :  { %v1609_v36 = vmul.f32 -1.442695, %v3153_v32  ;;  %v1705_v37 = vmul.f32 -1.442695, %v3156_v33  ;;  %v3163_v38 = vadd.f32 %v3148_v25, %v540_v34  ;;  %v3166_v39 = vadd.f32 %v3148_v25, %v1259_v35  ;;  %v1759_v40 = vpop.f32.mrb[4].mxu0  ;;  %v1871_v41 = vpop.f32.mrb[4].mxu1 }
 0x16c   :  { %v1760_v42 = vpop.f32.mrb[5].mxu0  ;;  %v1872_v43 = vpop.f32.mrb[5].mxu1 }
 0x16d   :  { %2425 = vpow2.f32 %v1609_v36  ;;  %v1610_v44 = vmul.f32 -1.442695, %v3163_v38  ;;  %v1706_v45 = vmul.f32 -1.442695, %v3166_v39  ;;  %v1761_v46 = vadd.f32 %v1760_v42, %v1759_v40  ;;  %v1762_v47 = vpop.f32.mrb[6].mxu0  ;;  %v1874_v48 = vpop.f32.mrb[6].mxu1 }
 0x16e   :  { %2427 = vpow2.f32 %v1705_v37  ;;  %v1873_v49 = vadd.f32 %v1872_v43, %v1871_v41  ;;  %v1763_v50 = vpop.f32.mrb[7].mxu0  ;;  %v1875_v51 = vpop.f32.mrb[7].mxu1 }
 0x16f   :  { %2429 = vpow2.f32 %v1610_v44  ;;  %v541_v52 = vmul.f32 %v1761_v46, %v3143_v18  ;;  %v1764_v53 = vadd.f32 %v1763_v50, %v1762_v47  ;;  %v1876_v54 = vadd.f32 %v1875_v51, %v1874_v48 }
 0x170   :  { %2431 = vpow2.f32 %v1706_v45  ;;  %v1260_v55 = vmul.f32 %v1873_v49, %v3143_v18 }
 0x171   :  { %v3173_v56 = vadd.f32 %v3148_v25, %v541_v52  ;;  %v542_v57 = vmul.f32 %v1764_v53, %v3143_v18  ;;  %v1261_v58 = vmul.f32 %v1876_v54, %v3143_v18 }
 0x172   :  { %v3178_v59 = vadd.f32 %v3148_v25, %v1260_v55 }
 0x173   :  { %v1611_v60 = vmul.f32 -1.442695, %v3173_v56  ;;  %v3182_v61 = vadd.f32 %v3148_v25, %v542_v57  ;;  %v3185_v62 = vadd.f32 %v3148_v25, %v1261_v58  ;;  %v1765_v63 = vpop.f32.mrb[8].mxu0  ;;  %v1877_v0 = vpop.f32.mrb[8].mxu1 }
 0x174   :  { %v1707_v1 = vmul.f32 -1.442695, %v3178_v59  ;;  %v1766_v2 = vpop.f32.mrb[9].mxu0  ;;  %v1878_v3 = vpop.f32.mrb[9].mxu1 }
 0x175   :  { %2433 = vpow2.f32 %v1611_v60  ;;  %v1612_v4 = vmul.f32 -1.442695, %v3182_v61  ;;  %v1708_v5 = vmul.f32 -1.442695, %v3185_v62  ;;  %v1767_v6 = vadd.f32 %v1766_v2, %v1765_v63  ;;  %v1768_v7 = vpop.f32.mrb[10].mxu0  ;;  %v1880_v8 = vpop.f32.mrb[10].mxu1 }
 0x176   :  { %2435 = vpow2.f32 %v1707_v1  ;;  %v1879_v9 = vadd.f32 %v1878_v3, %v1877_v0  ;;  %v1769_v10 = vpop.f32.mrb[11].mxu0  ;;  %v1881_v11 = vpop.f32.mrb[11].mxu1 }
 0x177   :  { %v2426_v12 = vpop.eup %2425  ;;  %2437 = vpow2.f32 %v1612_v4  ;;  %v543_v13 = vmul.f32 %v1767_v6, %v3143_v18  ;;  %v1770_v14 = vadd.f32 %v1769_v10, %v1768_v7  ;;  %v1882_v15 = vadd.f32 %v1881_v11, %v1880_v8 }
 0x178   :  { %v2428_v16 = vpop.eup %2427  ;;  %v705_v17 = vadd.f32 1.0, %v2426_v12  ;;  %2439 = vpow2.f32 %v1708_v5  ;;  %v1262_v19 = vmul.f32 %v1879_v9, %v3143_v18 }
 0x179   :  { %v2430_v20 = vpop.eup %2429  ;;  %v1418_v21 = vadd.f32 1.0, %v2428_v16  ;;  %v3193_v22 = vadd.f32 %v3148_v25, %v543_v13  ;;  %v544_v23 = vmul.f32 %v1770_v14, %v3143_v18  ;;  %v1263_v24 = vmul.f32 %v1882_v15, %v3143_v18 }
 0x17a   :  { %v2432_v26 = vpop.eup %2431  ;;  %2441 = vrcp.f32 %v705_v17  ;;  %v706_v27 = vadd.f32 1.0, %v2430_v20  ;;  %v3198_v28 = vadd.f32 %v3148_v25, %v1262_v19 }
 0x17b   :  { %2443 = vrcp.f32 %v1418_v21  ;;  %v1419_v29 = vadd.f32 1.0, %v2432_v26  ;;  %v1613_v30 = vmul.f32 -1.442695, %v3193_v22  ;;  %v3202_v31 = vadd.f32 %v3148_v25, %v544_v23  ;;  %v1771_v34 = vpop.f32.mrb[12].mxu0  ;;  %v1883_v35 = vpop.f32.mrb[12].mxu1 }
 0x17c   :  { %2445 = vrcp.f32 %v706_v27  ;;  %v1709_v36 = vmul.f32 -1.442695, %v3198_v28  ;;  %v3206_v37 = vadd.f32 %v3148_v25, %v1263_v24  ;;  %v1772_v40 = vpop.f32.mrb[13].mxu0  ;;  %v1884_v41 = vpop.f32.mrb[13].mxu1 }
 0x17d   :  { %2447 = vrcp.f32 %v1419_v29  ;;  %v1614_v42 = vmul.f32 -1.442695, %v3202_v31  ;;  %v1773_v43 = vadd.f32 %v1772_v40, %v1771_v34  ;;  %v1885_v44 = vadd.f32 %v1884_v41, %v1883_v35  ;;  %v1774_v45 = vpop.f32.mrb[14].mxu0  ;;  %v1886_v46 = vpop.f32.mrb[14].mxu1 }
 0x17e   :  { %2449 = vpow2.f32 %v1613_v30  ;;  %v1710_v47 = vmul.f32 -1.442695, %v3206_v37  ;;  %v1775_v48 = vpop.f32.mrb[15].mxu0  ;;  %v1887_v49 = vpop.f32.mrb[15].mxu1 }
 0x17f   :  { %v2434_v50 = vpop.eup %2433  ;;  %2451 = vpow2.f32 %v1709_v36  ;;  %v545_v51 = vmul.f32 %v1773_v43, %v3143_v18  ;;  %v1264_v52 = vmul.f32 %v1885_v44, %v3143_v18  ;;  %v1776_v53 = vadd.f32 %v1775_v48, %v1774_v45 }
 0x180   :  { %v2436_v54 = vpop.eup %2435  ;;  %v707_v55 = vadd.f32 1.0, %v2434_v50  ;;  %2453 = vpow2.f32 %v1614_v42  ;;  %v1888_v57 = vadd.f32 %v1887_v49, %v1886_v46 }
 0x181   :  { %v2438_v58 = vpop.eup %2437  ;;  %v1420_v60 = vadd.f32 1.0, %v2436_v54  ;;  %2455 = vpow2.f32 %v1710_v47  ;;  %v3213_v63 = vadd.f32 %v3148_v25, %v545_v51  ;;  %v3216_v0 = vadd.f32 %v3148_v25, %v1264_v52 }
 0x182   :  { %v2440_v1 = vpop.eup %2439  ;;  %2457 = vrcp.f32 %v707_v55  ;;  %v708_v2 = vadd.f32 1.0, %v2438_v58  ;;  %v546_v3 = vmul.f32 %v1776_v53, %v3143_v18  ;;  %v1265_v4 = vmul.f32 %v1888_v57, %v3143_v18 }
 0x183   :  { %2459 = vrcp.f32 %v1420_v60  ;;  %v1421_v5 = vadd.f32 1.0, %v2440_v1  ;;  %v1615_v6 = vmul.f32 -1.442695, %v3213_v63  ;;  %v1711_v7 = vmul.f32 -1.442695, %v3216_v0  ;;  %v1777_v8 = vpop.f32.mrb[16].mxu0 }
 0x184   :  { %v2442_v9 = vpop.eup %2441  ;;  %2461 = vrcp.f32 %v708_v2  ;;  %v3223_v10 = vadd.f32 %v3148_v25, %v546_v3  ;;  %v3226_v11 = vadd.f32 %v3148_v25, %v1265_v4  ;;  %v1889_v12 = vpop.f32.mrb[16].mxu1 }
 0x185   :  { %v1778_v13 = vpop.f32.mrb[17].mxu0  ;;  %v2444_v14 = vpop.eup %2443  ;;  %v801_v15 = vmul.f32 %v2442_v9, %v3153_v32  ;;  %2463 = vrcp.f32 %v1421_v5 }
 0x186   :  { %v1779_v16 = vadd.f32 %v1778_v13, %v1777_v8  ;;  %v1890_v17 = vpop.f32.mrb[17].mxu1  ;;  %v1780_v19 = vpop.f32.mrb[18].mxu0  ;;  %v1514_v21 = vmul.f32 %v2444_v14, %v3156_v33  ;;  %2465 = vpow2.f32 %v1615_v6  ;;  %v1616_v23 = vmul.f32 -1.442695, %v3223_v10 }
 0x187   :  { %v2446_v20 = vpop.eup %2445  ;;  %v1712_v24 = vmul.f32 -1.442695, %v3226_v11  ;;  %v1892_v26 = vpop.f32.mrb[18].mxu1  ;;  %2467 = vpow2.f32 %v1711_v7  ;;  %v1891_v34 = vadd.f32 %v1890_v17, %v1889_v12 }
 0x188   :  { %v1781_v27 = vpop.f32.mrb[19].mxu0  ;;  %v2448_v29 = vpop.eup %2447  ;;  %v802_v30 = vmul.f32 %v2446_v20, %v3163_v38  ;;  %v547_v32 = vmul.f32 %v1779_v16, %v3143_v18  ;;  %2469 = vpow2.f32 %v1616_v23 }
 0x189   :  { %v1893_v35 = vpop.f32.mrb[19].mxu1  ;;  %v2450_v36 = vpop.eup %2449  ;;  %v1515_v40 = vmul.f32 %v2448_v29, %v3166_v39  ;;  %v1782_v33 = vadd.f32 %v1781_v27, %v1780_v19  ;;  %2471 = vpow2.f32 %v1712_v24  ;;  %v1266_v48 = vmul.f32 %v1891_v34, %v3143_v18 }
 0x18a   :  { %v1894_v41 = vadd.f32 %v1893_v35, %v1892_v26  ;;  %v2452_v42 = vpop.eup %2451  ;;  %v833_v43 = vadd.f32 %v802_v30, %v801_v15  ;;  %v709_v44 = vadd.f32 1.0, %v2450_v36  ;;  %v3236_v45 = vadd.f32 %v3148_v25, %v547_v32 }
 0x18b   :  { %v2454_v46 = vpop.eup %2453  ;;  %v1546_v38 = vadd.f32 %v1515_v40, %v1514_v21  ;;  %v1422_v47 = vadd.f32 1.0, %v2452_v42  ;;  %v548_v49 = vmul.f32 %v1782_v33, %v3143_v18  ;;  %v1783_v53 = vpop.f32.mrb[20].mxu0  ;;  %v3243_v58 = vadd.f32 %v3148_v25, %v1266_v48 }
 0x18c   :  { %v2456_v50 = vpop.eup %2455  ;;  %2473 = vrcp.f32 %v709_v44  ;;  %v710_v39 = vadd.f32 1.0, %v2454_v46  ;;  %v1617_v51 = vmul.f32 -1.442695, %v3236_v45  ;;  %v1267_v52 = vmul.f32 %v1894_v41, %v3143_v18  ;;  %v1895_v54 = vpop.f32.mrb[20].mxu1 }
 0x18d   :  { %v2458_v55 = vpop.eup %2457  ;;  %2475 = vrcp.f32 %v1422_v47  ;;  %v1423_v57 = vadd.f32 1.0, %v2456_v50  ;;  %v3246_v60 = vadd.f32 %v3148_v25, %v548_v49  ;;  %v1784_v1 = vpop.f32.mrb[21].mxu0  ;;  %v1713_v13 = vmul.f32 -1.442695, %v3243_v58 }
 0x18e   :  { %v1896_v2 = vpop.f32.mrb[21].mxu1  ;;  %v2460_v3 = vpop.eup %2459  ;;  %v803_v4 = vmul.f32 %v2458_v55, %v3173_v56  ;;  %2477 = vrcp.f32 %v710_v39  ;;  %v3250_v5 = vadd.f32 %v3148_v25, %v1267_v52  ;;  %v1785_v6 = vadd.f32 %v1784_v1, %v1783_v53 }
 0x18f   :  { %v1786_v7 = vpop.f32.mrb[22].mxu0  ;;  %v1898_v8 = vpop.f32.mrb[22].mxu1  ;;  %v1516_v12 = vmul.f32 %v2460_v3, %v3178_v59  ;;  %2479 = vrcp.f32 %v1423_v57  ;;  %v1618_v14 = vmul.f32 -1.442695, %v3246_v60  ;;  %v1897_v30 = vadd.f32 %v1896_v2, %v1895_v54 }
 0x190   :  { %v2462_v9 = vpop.eup %2461  ;;  %v1787_v15 = vpop.f32.mrb[23].mxu0  ;;  %v834_v19 = vadd.f32 %v833_v43, %v803_v4  ;;  %2481 = vpow2.f32 %v1617_v51  ;;  %v1714_v20 = vmul.f32 -1.442695, %v3250_v5  ;;  %v549_v59 = vmul.f32 %v1785_v6, %v3143_v18 }
 0x191   :  { %v1899_v16 = vpop.f32.mrb[23].mxu1  ;;  %v2464_v17 = vpop.eup %2463  ;;  %v804_v56 = vmul.f32 %v2462_v9, %v3182_v61  ;;  %v1547_v23 = vadd.f32 %v1546_v38, %v1516_v12  ;;  %2483 = vpow2.f32 %v1713_v13  ;;  %v1788_v33 = vadd.f32 %v1787_v15, %v1786_v7 }
 0x192   :  { %v2466_v21 = vpop.eup %2465  ;;  %v1517_v24 = vmul.f32 %v2464_v17, %v3185_v62  ;;  %2485 = vpow2.f32 %v1618_v14  ;;  %v3260_v61 = vadd.f32 %v3148_v25, %v549_v59  ;;  %v1268_v62 = vmul.f32 %v1897_v30, %v3143_v18 }
 0x193   :  { %v2468_v26 = vpop.eup %2467  ;;  %v835_v27 = vadd.f32 %v834_v19, %v804_v56  ;;  %v711_v29 = vadd.f32 1.0, %v2466_v21  ;;  %2487 = vpow2.f32 %v1714_v20  ;;  %v1789_v41 = vpop.f32.mrb[24].mxu0  ;;  %v1900_v46 = vadd.f32 %v1899_v16, %v1898_v8 }
 0x194   :  { %v2470_v32 = vpop.eup %2469  ;;  %v1548_v34 = vadd.f32 %v1547_v23, %v1517_v24  ;;  %v1424_v35 = vadd.f32 1.0, %v2468_v26  ;;  %v1901_v42 = vpop.f32.mrb[24].mxu1  ;;  %v1619_v44 = vmul.f32 -1.442695, %v3260_v61  ;;  %v3265_v49 = vadd.f32 %v3148_v25, %v1268_v62 }
 0x195   :  { %v2472_v36 = vpop.eup %2471  ;;  %2489 = vrcp.f32 %v711_v29  ;;  %v712_v40 = vadd.f32 1.0, %v2470_v32  ;;  %v1790_v38 = vpop.f32.mrb[25].mxu0  ;;  %v550_v50 = vmul.f32 %v1788_v33, %v3143_v18  ;;  %v1269_v55 = vmul.f32 %v1900_v46, %v3143_v18 }
 0x196   :  { %2491 = vrcp.f32 %v1424_v35  ;;  %v1425_v43 = vadd.f32 1.0, %v2472_v36  ;;  %v1902_v47 = vpop.f32.mrb[25].mxu1  ;;  %v2474_v48 = vpop.eup %2473  ;;  %v1791_v39 = vadd.f32 %v1790_v38, %v1789_v41  ;;  %v1715_v6 = vmul.f32 -1.442695, %v3265_v49 }
 0x197   :  { %2493 = vrcp.f32 %v712_v40  ;;  %v1792_v51 = vpop.f32.mrb[26].mxu0  ;;  %v1904_v52 = vpop.f32.mrb[26].mxu1  ;;  %v805_v54 = vmul.f32 %v2474_v48, %v3193_v22  ;;  %v1903_v57 = vadd.f32 %v1902_v47, %v1901_v42  ;;  %v3273_v7 = vadd.f32 %v3148_v25, %v550_v50 }
 0x198   :  { %v2476_v53 = vpop.eup %2475  ;;  %2495 = vrcp.f32 %v1425_v43  ;;  %v1793_v1 = vpop.f32.mrb[27].mxu0  ;;  %v3277_v22 = vadd.f32 %v3148_v25, %v1269_v55  ;;  %v551_v13 = vmul.f32 %v1791_v39, %v3143_v18 }
 0x199   :  { %v1905_v2 = vpop.f32.mrb[27].mxu1  ;;  %v2478_v3 = vpop.eup %2477  ;;  %v1518_v4 = vmul.f32 %v2476_v53, %v3198_v28  ;;  %2497 = vpow2.f32 %v1619_v44  ;;  %v836_v9 = vadd.f32 %v835_v27, %v805_v54  ;;  %v1620_v28 = vmul.f32 -1.442695, %v3273_v7 }
 0x19a   :  { %v2480_v8 = vpop.eup %2479  ;;  %v806_v12 = vmul.f32 %v2478_v3, %v3202_v31  ;;  %2499 = vpow2.f32 %v1715_v6  ;;  %v1716_v20 = vmul.f32 -1.442695, %v3277_v22  ;;  %v3284_v21 = vadd.f32 %v3148_v25, %v551_v13 }
 0x19b   :  { %v2482_v14 = vpop.eup %2481  ;;  %v1549_v15 = vadd.f32 %v1548_v34, %v1518_v4  ;;  %v1519_v16 = vmul.f32 %v2480_v8, %v3206_v37  ;;  %2501 = vpow2.f32 %v1620_v28  ;;  %v1270_v59 = vmul.f32 %v1903_v57, %v3143_v18  ;;  %v1795_v26 = vpop.f32.mrb[28].mxu0 }
 0x19c   :  { %v2484_v17 = vpop.eup %2483  ;;  %v837_v19 = vadd.f32 %v836_v9, %v806_v12  ;;  %v713_v56 = vadd.f32 1.0, %v2482_v14  ;;  %v1907_v27 = vpop.f32.mrb[28].mxu1  ;;  %v1621_v30 = vmul.f32 -1.442695, %v3284_v21  ;;  %v1794_v32 = vadd.f32 %v1793_v1, %v1792_v51 }
 0x19d   :  { %v2486_v31 = vpop.eup %2485  ;;  %v1550_v23 = vadd.f32 %v1549_v15, %v1519_v16  ;;  %v1426_v24 = vadd.f32 1.0, %v2484_v17  ;;  %v1796_v34 = vpop.f32.mrb[29].mxu0  ;;  %v3289_v62 = vadd.f32 %v3148_v25, %v1270_v59  ;;  %v1906_v33 = vadd.f32 %v1905_v2, %v1904_v52 }
 0x19e   :  { %v2488_v37 = vpop.eup %2487  ;;  %2503 = vrcp.f32 %v713_v56  ;;  %v714_v29 = vadd.f32 1.0, %v2486_v31  ;;  %v1908_v35 = vpop.f32.mrb[29].mxu1  ;;  %v552_v46 = vmul.f32 %v1794_v32, %v3143_v18  ;;  %v1797_v38 = vadd.f32 %v1796_v34, %v1795_v26 }
 0x19f   :  { %v2490_v36 = vpop.eup %2489  ;;  %2505 = vrcp.f32 %v1426_v24  ;;  %v1427_v40 = vadd.f32 1.0, %v2488_v37  ;;  %v1798_v41 = vpop.f32.mrb[30].mxu0  ;;  %v1717_v51 = vmul.f32 -1.442695, %v3289_v62  ;;  %v1271_v53 = vmul.f32 %v1906_v33, %v3143_v18 }
 0x1a0   :  { %v1910_v42 = vpop.f32.mrb[30].mxu1  ;;  %v2492_v43 = vpop.eup %2491  ;;  %v807_v44 = vmul.f32 %v2490_v36, %v3213_v63  ;;  %2507 = vrcp.f32 %v714_v29  ;;  %v3298_v63 = vadd.f32 %v3148_v25, %v552_v46  ;;  %v553_v12 = vmul.f32 %v1797_v38, %v3143_v18 }
 0x1a1   :  { %v1799_v47 = vpop.f32.mrb[31].mxu0  ;;  %v1911_v48 = vpop.f32.mrb[31].mxu1  ;;  %v1520_v39 = vmul.f32 %v2492_v43, %v3216_v0  ;;  %2509 = vrcp.f32 %v1427_v40  ;;  %v3302_v0 = vadd.f32 %v3148_v25, %v1271_v53  ;;  %v1909_v13 = vadd.f32 %v1908_v35, %v1907_v27 }
 0x1a2   :  { %v2494_v50 = vpop.eup %2493  ;;  %v838_v54 = vadd.f32 %v837_v19, %v807_v44  ;;  %2511 = vpow2.f32 %v1716_v20  ;;  %v1622_v6 = vmul.f32 -1.442695, %v3298_v63  ;;  %v1800_v16 = vadd.f32 %v1799_v47, %v1798_v41 }
 0x1a3   :  { %v2496_v52 = vpop.eup %2495  ;;  %v808_v55 = vmul.f32 %v2494_v50, %v3223_v10  ;;  %v1551_v1 = vadd.f32 %v1550_v23, %v1520_v39  ;;  %2513 = vpow2.f32 %v1621_v30  ;;  %v1718_v10 = vmul.f32 -1.442695, %v3302_v0  ;;  %v1801_v14 = vpop.f32.mrb[32].mxu0 }
 0x1a4   :  { %v2498_v57 = vpop.eup %2497  ;;  %v1521_v2 = vmul.f32 %v2496_v52, %v3226_v11  ;;  %2515 = vpow2.f32 %v1717_v51  ;;  %v1913_v15 = vpop.f32.mrb[32].mxu1  ;;  %v1912_v28 = vadd.f32 %v1911_v48, %v1910_v42  ;;  %v3308_v20 = vadd.f32 %v3148_v25, %v553_v12 }
 0x1a5   :  { %v839_v3 = vadd.f32 %v838_v54, %v808_v55  ;;  %v715_v4 = vadd.f32 1.0, %v2498_v57  ;;  %v2500_v8 = vpop.eup %2499  ;;  %v1802_v17 = vpop.f32.mrb[33].mxu0  ;;  %v1272_v31 = vmul.f32 %v1909_v13, %v3143_v18  ;;  %v554_v37 = vmul.f32 %v1800_v16, %v3143_v18 }
 0x1a6   :  { %v1552_v9 = vadd.f32 %v1551_v1, %v1521_v2  ;;  %v1428_v11 = vadd.f32 1.0, %v2500_v8  ;;  %v1914_v19 = vpop.f32.mrb[33].mxu1  ;;  %v2502_v56 = vpop.eup %2501  ;;  %v1803_v23 = vadd.f32 %v1802_v17, %v1801_v14  ;;  %v1273_v29 = vmul.f32 %v1912_v28, %v3143_v18 }
 0x1a7   :  { %2517 = vrcp.f32 %v715_v4  ;;  %v1804_v24 = vpop.f32.mrb[34].mxu0  ;;  %v1916_v59 = vpop.f32.mrb[34].mxu1  ;;  %v716_v27 = vadd.f32 1.0, %v2502_v56  ;;  %v1623_v36 = vmul.f32 -1.442695, %v3308_v20  ;;  %v3316_v40 = vadd.f32 %v3148_v25, %v1272_v31 }
 0x1a8   :  { %2519 = vpow2.f32 %v1622_v6  ;;  %v2504_v26 = vpop.eup %2503  ;;  %v1805_v30 = vpop.f32.mrb[35].mxu0  ;;  %v3320_v42 = vadd.f32 %v3148_v25, %v554_v37  ;;  %v3323_v43 = vadd.f32 %v3148_v25, %v1273_v29  ;;  %v555_v54 = vmul.f32 %v1803_v23, %v3143_v18 }
 0x1a9   :  { %2521 = vrcp.f32 %v1428_v11  ;;  %v1917_v32 = vpop.f32.mrb[35].mxu1  ;;  %v2506_v34 = vpop.eup %2505  ;;  %v809_v35 = vmul.f32 %v2504_v26, %v3236_v45  ;;  %v1719_v38 = vmul.f32 -1.442695, %v3316_v40 }
 0x1aa   :  { %2523 = vpow2.f32 %v1718_v10  ;;  %v2508_v33 = vpop.eup %2507  ;;  %v1522_v41 = vmul.f32 %v2506_v34, %v3243_v58  ;;  %v1624_v58 = vmul.f32 -1.442695, %v3320_v42  ;;  %v1720_v39 = vmul.f32 -1.442695, %v3323_v43 }
 0x1ab   :  { %2525 = vrcp.f32 %v716_v27  ;;  %v2510_v44 = vpop.eup %2509  ;;  %v840_v46 = vadd.f32 %v839_v3, %v809_v35  ;;  %v810_v45 = vmul.f32 %v2508_v33, %v3246_v60  ;;  %v1807_v55 = vpop.f32.mrb[36].mxu0  ;;  %v1915_v3 = vadd.f32 %v1914_v19, %v1913_v15 }
 0x1ac   :  { %2527 = vpow2.f32 %v1623_v36  ;;  %v2512_v47 = vpop.eup %2511  ;;  %v1553_v48 = vadd.f32 %v1552_v9, %v1522_v41  ;;  %v1523_v50 = vmul.f32 %v2510_v44, %v3250_v5  ;;  %v1919_v57 = vpop.f32.mrb[36].mxu1  ;;  %v3332_v8 = vadd.f32 %v3148_v25, %v555_v54 }
 0x1ad   :  { %v2514_v51 = vpop.eup %2513  ;;  %v841_v53 = vadd.f32 %v840_v46, %v810_v45  ;;  %v1429_v52 = vadd.f32 1.0, %v2512_v47  ;;  %2529 = vpow2.f32 %v1719_v38  ;;  %v1808_v4 = vpop.f32.mrb[37].mxu0  ;;  %v1806_v9 = vadd.f32 %v1805_v30, %v1804_v24 }
 0x1ae   :  { %v2516_v60 = vpop.eup %2515  ;;  %v1554_v1 = vadd.f32 %v1553_v48, %v1523_v50  ;;  %v717_v2 = vadd.f32 1.0, %v2514_v51  ;;  %2531 = vpow2.f32 %v1624_v58  ;;  %v1920_v6 = vpop.f32.mrb[37].mxu1  ;;  %v1274_v14 = vmul.f32 %v1915_v3, %v3143_v18 }
 0x1af   :  { %2533 = vrcp.f32 %v1429_v52  ;;  %v1430_v5 = vadd.f32 1.0, %v2516_v60  ;;  %v1810_v10 = vpop.f32.mrb[38].mxu0  ;;  %v1922_v12 = vpop.f32.mrb[38].mxu1  ;;  %v1918_v11 = vadd.f32 %v1917_v32, %v1916_v59  ;;  %v1809_v16 = vadd.f32 %v1808_v4, %v1807_v55 }
 0x1b0   :  { %2535 = vrcp.f32 %v717_v2  ;;  %v1811_v28 = vpop.f32.mrb[39].mxu0  ;;  %v1923_v17 = vpop.f32.mrb[39].mxu1  ;;  %v1625_v19 = vmul.f32 -1.442695, %v3332_v8  ;;  %v556_v31 = vmul.f32 %v1806_v9, %v3143_v18  ;;  %v3339_v26 = vadd.f32 %v3148_v25, %v1274_v14 }
 0x1b1   :  { %v2518_v13 = vpop.eup %2517  ;;  %2537 = vrcp.f32 %v1430_v5  ;;  %v1275_v27 = vmul.f32 %v1918_v11, %v3143_v18  ;;  %v1921_v48 = vadd.f32 %v1920_v6, %v1919_v57  ;;  %v1924_v2 = vadd.f32 %v1923_v17, %v1922_v12 }
 0x1b2   :  { %v2520_v56 = vpop.eup %2519  ;;  %v811_v15 = vmul.f32 %v2518_v13, %v3260_v61  ;;  %2539 = vpow2.f32 %v1720_v39  ;;  %v3344_v61 = vadd.f32 %v3148_v25, %v556_v31  ;;  %v1721_v34 = vmul.f32 -1.442695, %v3339_v26 }
 0x1b3   :  { %v2522_v23 = vpop.eup %2521  ;;  %v718_v24 = vadd.f32 1.0, %v2520_v56  ;;  %2541 = vpow2.f32 %v1625_v19  ;;  %v3348_v35 = vadd.f32 %v3148_v25, %v1275_v27  ;;  %v1813_v46 = vpop.f32.mrb[40].mxu0  ;;  %v1277_v11 = vmul.f32 %v1924_v2, %v3143_v18 }
 0x1b4   :  { %v2524_v59 = vpop.eup %2523  ;;  %v842_v37 = vadd.f32 %v841_v53, %v811_v15  ;;  %v1524_v29 = vmul.f32 %v2522_v23, %v3265_v49  ;;  %v1626_v44 = vmul.f32 -1.442695, %v3344_v61  ;;  %v557_v49 = vmul.f32 %v1809_v16, %v3143_v18  ;;  %v1925_v45 = vpop.f32.mrb[40].mxu1 }
 0x1b5   :  { %v2526_v30 = vpop.eup %2525  ;;  %2543 = vrcp.f32 %v718_v24  ;;  %v1431_v32 = vadd.f32 1.0, %v2524_v59  ;;  %v1722_v47 = vmul.f32 -1.442695, %v3348_v35  ;;  %v1814_v50 = vpop.f32.mrb[41].mxu0 }
 0x1b6   :  { %v2528_v36 = vpop.eup %2527  ;;  %v1555_v33 = vadd.f32 %v1554_v1, %v1524_v29  ;;  %v812_v41 = vmul.f32 %v2526_v30, %v3273_v7  ;;  %v1926_v58 = vpop.f32.mrb[41].mxu1  ;;  %v3355_v53 = vadd.f32 %v3148_v25, %v557_v49  ;;  %v1812_v7 = vadd.f32 %v1811_v28, %v1810_v10 }
 0x1b7   :  { %2545 = vrcp.f32 %v1431_v32  ;;  %v719_v38 = vadd.f32 1.0, %v2528_v36  ;;  %v2530_v39 = vpop.eup %2529  ;;  %v1816_v52 = vpop.f32.mrb[42].mxu0  ;;  %v1276_v1 = vmul.f32 %v1921_v48, %v3143_v18  ;;  %v1815_v17 = vadd.f32 %v1814_v50, %v1813_v46 }
 0x1b8   :  { %v843_v51 = vadd.f32 %v842_v37, %v812_v41  ;;  %2547 = vpow2.f32 %v1721_v34  ;;  %v1928_v54 = vpop.f32.mrb[42].mxu1  ;;  %v2532_v55 = vpop.eup %2531  ;;  %v1432_v60 = vadd.f32 1.0, %v2530_v39  ;;  %v1627_v5 = vmul.f32 -1.442695, %v3355_v53 }
 0x1b9   :  { %2549 = vrcp.f32 %v719_v38  ;;  %v1817_v3 = vpop.f32.mrb[43].mxu0  ;;  %v1929_v4 = vpop.f32.mrb[43].mxu1  ;;  %v720_v6 = vadd.f32 1.0, %v2532_v55  ;;  %v558_v9 = vmul.f32 %v1812_v7, %v3143_v18  ;;  %v3362_v14 = vadd.f32 %v3148_v25, %v1276_v1 }
 0x1ba   :  { %v2534_v57 = vpop.eup %2533  ;;  %2551 = vpow2.f32 %v1626_v44  ;;  %v3375_v32 = vadd.f32 %v3148_v25, %v1277_v11  ;;  %v1927_v41 = vadd.f32 %v1926_v58, %v1925_v45  ;;  %v1930_v48 = vadd.f32 %v1929_v4, %v1928_v54 }
 0x1bb   :  { %v2536_v13 = vpop.eup %2535  ;;  %v1525_v10 = vmul.f32 %v2534_v57, %v3277_v22  ;;  %2553 = vrcp.f32 %v1432_v60  ;;  %v3367_v28 = vadd.f32 %v3148_v25, %v558_v9  ;;  %v1723_v22 = vmul.f32 -1.442695, %v3362_v14  ;;  %v1819_v59 = vpop.f32.mrb[44].mxu0 }
 0x1bc   :  { %v2538_v16 = vpop.eup %2537  ;;  %v813_v12 = vmul.f32 %v2536_v13, %v3284_v21  ;;  %2555 = vrcp.f32 %v720_v6  ;;  %v3372_v21 = vpop.f32.mrb[44].mxu1  ;;  %v1724_v38 = vmul.f32 -1.442695, %v3375_v32  ;;  %v1278_v60 = vmul.f32 %v1927_v41, %v3143_v18 }
 0x1bd   :  { %v2540_v56 = vpop.eup %2539  ;;  %v1556_v15 = vadd.f32 %v1555_v33, %v1525_v10  ;;  %v1526_v19 = vmul.f32 %v2538_v16, %v3289_v62  ;;  %2557 = vpow2.f32 %v1722_v47  ;;  %v1628_v27 = vmul.f32 -1.442695, %v3367_v28  ;;  %v1820_v62 = vpop.f32.mrb[45].mxu0 }
 0x1be   :  { %v2542_v31 = vpop.eup %2541  ;;  %v844_v23 = vadd.f32 %v843_v51, %v813_v12  ;;  %v1433_v24 = vadd.f32 1.0, %v2540_v56  ;;  %2559 = vpow2.f32 %v1627_v5  ;;  %v1932_v34 = vpop.f32.mrb[45].mxu1  ;;  %v559_v33 = vmul.f32 %v1815_v17, %v3143_v18 }
 0x1bf   :  { %v2544_v37 = vpop.eup %2543  ;;  %v1557_v29 = vadd.f32 %v1556_v15, %v1526_v19  ;;  %v721_v30 = vadd.f32 1.0, %v2542_v31  ;;  %2561 = vpow2.f32 %v1723_v22  ;;  %v1822_v44 = vpop.f32.mrb[46].mxu0  ;;  %v1818_v47 = vadd.f32 %v1817_v3, %v1816_v52 }
 0x1c0   :  { %v814_v36 = vmul.f32 %v2544_v37, %v3298_v63  ;;  %2563 = vrcp.f32 %v1433_v24  ;;  %v3379_v49 = vpop.f32.mrb[46].mxu1  ;;  %v1823_v50 = vpop.f32.mrb[47].mxu0  ;;  %v3384_v63 = vadd.f32 %v3148_v25, %v559_v33  ;;  %v1279_v4 = vmul.f32 %v1930_v48, %v3143_v18 }
 0x1c1   :  { %v2546_v46 = vpop.eup %2545  ;;  %2565 = vrcp.f32 %v721_v30  ;;  %v1935_v39 = vpop.f32.mrb[47].mxu1  ;;  %v560_v1 = vmul.f32 %v1818_v47, %v3143_v18  ;;  %v3392_v6 = vadd.f32 %v3148_v25, %v1278_v60  ;;  %v1821_v24 = vadd.f32 %v1820_v62, %v1819_v59  ;;  %v3415_v59 = vld [vmem:[%s3626_s2] ss:$0 sm:$0xff] }
 0x1c2   :  { %v2548_v51 = vpop.eup %2547  ;;  %v845_v7 = vadd.f32 %v844_v23, %v814_v36  ;;  %v1527_v55 = vmul.f32 %v2546_v46, %v3302_v0  ;;  %2567 = vpow2.f32 %v1628_v27  ;;  %v1629_v3 = vmul.f32 -1.442695, %v3384_v63 }
 0x1c3   :  { %v2550_v45 = vpop.eup %2549  ;;  %v1434_v58 = vadd.f32 1.0, %v2548_v51  ;;  %2569 = vpow2.f32 %v1724_v38  ;;  %v3395_v5 = vadd.f32 %v3148_v25, %v560_v1  ;;  %v1825_v11 = vpop.f32.mrb[48].mxu0  ;;  %v1725_v17 = vmul.f32 -1.442695, %v3392_v6 }
 0x1c4   :  { %v2552_v2 = vpop.eup %2551  ;;  %v1558_v52 = vadd.f32 %v1557_v29, %v1527_v55  ;;  %v815_v54 = vmul.f32 %v2550_v45, %v3308_v20  ;;  %v3399_v20 = vadd.f32 %v3148_v25, %v1279_v4  ;;  %v1937_v16 = vpop.f32.mrb[48].mxu1  ;;  %v1933_v30 = vadd.f32 %v1932_v34, %v3372_v21  ;;  %v3425_v55 = vld [vmem:[%s3627_s3] ss:$0 sm:$0xff] }
 0x1c5   :  { %v2554_v0 = vpop.eup %2553  ;;  %2571 = vrcp.f32 %v1434_v58  ;;  %v722_v57 = vadd.f32 1.0, %v2552_v2  ;;  %v1630_v56 = vmul.f32 -1.442695, %v3395_v5  ;;  %v1826_v15 = vpop.f32.mrb[49].mxu0  ;;  %v561_v62 = vmul.f32 %v3415_v59, %v1821_v24 }
 0x1c6   :  { %v2556_v9 = vpop.eup %2555  ;;  %v846_v13 = vadd.f32 %v845_v7, %v815_v54  ;;  %v1528_v10 = vmul.f32 %v2554_v0, %v3316_v40  ;;  %2573 = vpow2.f32 %v1629_v3  ;;  %v1938_v19 = vpop.f32.mrb[49].mxu1  ;;  %v1726_v40 = vmul.f32 -1.442695, %v3399_v20 }
 0x1c7   :  { %v2558_v18 = vpop.eup %2557  ;;  %v816_v12 = vmul.f32 %v2556_v9, %v3320_v42  ;;  %2575 = vrcp.f32 %v722_v57  ;;  %v3405_v25 = vpop.f32.mrb[50].mxu0  ;;  %v1824_v38 = vadd.f32 %v1823_v50, %v1822_v44  ;;  %v1280_v21 = vmul.f32 %v3415_v59, %v1933_v30 }
 0x1c8   :  { %v2560_v22 = vpop.eup %2559  ;;  %v1559_v31 = vadd.f32 %v1558_v52, %v1528_v10  ;;  %v1435_v23 = vadd.f32 1.0, %v2558_v18  ;;  %v3407_v27 = vpop.f32.mrb[50].mxu1  ;;  %2577 = vpow2.f32 %v1725_v17  ;;  %v1936_v34 = vadd.f32 %v1935_v39, %v3379_v49 }
 0x1c9   :  { %v2562_v37 = vpop.eup %2561  ;;  %v847_v29 = vadd.f32 %v846_v13, %v816_v12  ;;  %v723_v42 = vadd.f32 1.0, %v2560_v22  ;;  %v1829_v36 = vpop.f32.mrb[51].mxu0  ;;  %v3428_v45 = vadd.f32 %v3425_v55, %v561_v62  ;;  %v562_v44 = vmul.f32 %v3415_v59, %v1824_v38 }
 0x1ca   :  { %v3410_v33 = vpop.f32.mrb[51].mxu1  ;;  %v2564_v41 = vpop.eup %2563  ;;  %2579 = vrcp.f32 %v1435_v23  ;;  %v1436_v46 = vadd.f32 1.0, %v2562_v37  ;;  %v3432_v49 = vadd.f32 %v3425_v55, %v1280_v21  ;;  %v1281_v4 = vmul.f32 %v3415_v59, %v1936_v34 }
 0x1cb   :  { %v2566_v47 = vpop.eup %2565  ;;  %v1529_v48 = vmul.f32 %v2564_v41, %v3323_v43  ;;  %2581 = vrcp.f32 %v723_v42  ;;  %v1631_v60 = vmul.f32 -1.442695, %v3428_v45  ;;  %v3435_v1 = vpop.f32.mrb[52].mxu0  ;;  %v3441_v3 = vadd.f32 %v3425_v55, %v562_v44 }
 0x1cc   :  { %v2568_v51 = vpop.eup %2567  ;;  %v817_v7 = vmul.f32 %v2566_v47, %v3332_v8  ;;  %2583 = vrcp.f32 %v1436_v46  ;;  %v3437_v2 = vpop.f32.mrb[52].mxu1  ;;  %v1727_v54 = vmul.f32 -1.442695, %v3432_v49  ;;  %v1827_v10 = vadd.f32 %v1826_v15, %v1825_v11 }
 0x1cd   :  { %v2570_v43 = vpop.eup %2569  ;;  %v1560_v50 = vadd.f32 %v1559_v31, %v1529_v48  ;;  %v724_v58 = vadd.f32 1.0, %v2568_v51  ;;  %2585 = vpow2.f32 %v1630_v56  ;;  %v3444_v0 = vpop.f32.mrb[53].mxu0  ;;  %v1939_v18 = vadd.f32 %v1938_v19, %v1937_v16 }
 0x1ce   :  { %v848_v39 = vadd.f32 %v847_v29, %v817_v7  ;;  %v1437_v8 = vadd.f32 1.0, %v2570_v43  ;;  %2587 = vpow2.f32 %v1726_v40  ;;  %v3446_v57 = vpop.f32.mrb[53].mxu1  ;;  %v3449_v12 = vpop.f32.mrb[54].mxu0  ;;  %v1632_v31 = vmul.f32 -1.442695, %v3441_v3 }
 0x1cf   :  { %v2572_v52 = vpop.eup %2571  ;;  %2589 = vrcp.f32 %v724_v58  ;;  %v3451_v17 = vpop.f32.mrb[54].mxu1  ;;  %v3455_v23 = vadd.f32 %v3425_v55, %v1281_v4  ;;  %v563_v11 = vmul.f32 %v3415_v59, %v1827_v10  ;;  %v1282_v19 = vmul.f32 %v3415_v59, %v1939_v18 }
 0x1d0   :  { %v2574_v9 = vpop.eup %2573  ;;  %v1530_v13 = vmul.f32 %v2572_v52, %v3339_v26  ;;  %2591 = vrcp.f32 %v1437_v8  ;;  %v1835_v40 = vpop.f32.mrb[55].mxu0  ;;  %v1830_v29 = vadd.f32 %v1829_v36, %v3405_v25  ;;  %v1942_v36 = vadd.f32 %v3410_v33, %v3407_v27 }
 0x1d1   :  { %v2576_v56 = vpop.eup %2575  ;;  %v725_v22 = vadd.f32 1.0, %v2574_v9  ;;  %2593 = vpow2.f32 %v1631_v60  ;;  %v3457_v24 = vpop.f32.mrb[55].mxu1  ;;  %v1728_v15 = vmul.f32 -1.442695, %v3455_v23  ;;  %v3465_v46 = vadd.f32 %v3425_v55, %v563_v11 }
 0x1d2   :  { %v1561_v37 = vadd.f32 %v1560_v50, %v1530_v13  ;;  %v818_v26 = vmul.f32 %v2576_v56, %v3344_v61  ;;  %2595 = vpow2.f32 %v1727_v54  ;;  %v2578_v16 = vpop.eup %2577  ;;  %v3469_v38 = vadd.f32 %v3425_v55, %v1282_v19 }
 0x1d3   :  { %2597 = vrcp.f32 %v725_v22  ;;  %v1438_v41 = vadd.f32 1.0, %v2578_v16  ;;  %v564_v47 = vmul.f32 %v3415_v59, %v1830_v29  ;;  %v1633_v25 = vmul.f32 -1.442695, %v3465_v46  ;;  %v3476_v34 = vpop.f32.mrb[56].mxu0  ;;  %v3478_v51 = vpop.f32.mrb[56].mxu1 }
 0x1d4   :  { %v2580_v42 = vpop.eup %2579  ;;  %v849_v30 = vadd.f32 %v848_v39, %v818_v26  ;;  %2599 = vpow2.f32 %v1632_v31  ;;  %v1729_v43 = vmul.f32 -1.442695, %v3469_v38  ;;  %v3487_v58 = vpop.f32.mrb[57].mxu1  ;;  %v1283_v33 = vmul.f32 %v3415_v59, %v1942_v36 }
 0x1d5   :  { %v2582_v62 = vpop.eup %2581  ;;  %v1531_v61 = vmul.f32 %v2580_v42, %v3348_v35  ;;  %2601 = vpow2.f32 %v1728_v15  ;;  %v3483_v50 = vadd.f32 %v3425_v55, %v564_v47  ;;  %v3492_v52 = vpop.f32.mrb[58].mxu1  ;;  %v1833_v31 = vadd.f32 %v3444_v0, %v3435_v1 }
 0x1d6   :  { %v2584_v48 = vpop.eup %2583  ;;  %v819_v21 = vmul.f32 %v2582_v62, %v3355_v53  ;;  %2603 = vrcp.f32 %v1438_v41  ;;  %v3485_v53 = vpop.f32.mrb[57].mxu0  ;;  %v3501_v22 = vadd.f32 %v3425_v55, %v1283_v33  ;;  %v1945_v11 = vadd.f32 %v3446_v57, %v3437_v2 }
 0x1d7   :  { %v2586_v35 = vpop.eup %2585  ;;  %v1562_v7 = vadd.f32 %v1561_v37, %v1531_v61  ;;  %v1532_v44 = vmul.f32 %v2584_v48, %v3362_v14  ;;  %2605 = vpow2.f32 %v1633_v25  ;;  %v3490_v60 = vpop.f32.mrb[58].mxu0  ;;  %v1634_v9 = vmul.f32 -1.442695, %v3483_v50 }
 0x1d8   :  { %v2588_v39 = vpop.eup %2587  ;;  %v850_v8 = vadd.f32 %v849_v30, %v819_v21  ;;  %v726_v27 = vadd.f32 1.0, %v2586_v35  ;;  %2607 = vpow2.f32 %v1729_v43  ;;  %v3495_v13 = vpop.f32.mrb[59].mxu0  ;;  %v1836_v16 = vadd.f32 %v1835_v40, %v3449_v12 }
 0x1d9   :  { %v2590_v14 = vpop.eup %2589  ;;  %v1563_v54 = vadd.f32 %v1562_v7, %v1532_v44  ;;  %v1439_v4 = vadd.f32 1.0, %v2588_v39  ;;  %v3497_v10 = vpop.f32.mrb[59].mxu1  ;;  %v565_v1 = vmul.f32 %v3415_v59, %v1833_v31  ;;  %v1284_v0 = vmul.f32 %v3415_v59, %v1945_v11 }
 0x1da   :  { %v2592_v18 = vpop.eup %2591  ;;  %v820_v56 = vmul.f32 %v2590_v14, %v3367_v28  ;;  %2609 = vrcp.f32 %v726_v27  ;;  %v1730_v28 = vmul.f32 -1.442695, %v3501_v22  ;;  %v566_v2 = vmul.f32 %v3415_v59, %v1836_v16 }
 0x1db   :  { %v2594_v37 = vpop.eup %2593  ;;  %v1533_v26 = vmul.f32 %v2592_v18, %v3375_v32  ;;  %2611 = vrcp.f32 %v1439_v4  ;;  %v1948_v57 = vadd.f32 %v3457_v24, %v3451_v17  ;;  %v3516_v12 = vpop.f32.mrb[60].mxu0  ;;  %v3521_v48 = vadd.f32 %v3425_v55, %v565_v1 }
 0x1dc   :  { %v2596_v15 = vpop.eup %2595  ;;  %v851_v19 = vadd.f32 %v850_v8, %v820_v56  ;;  %v727_v29 = vadd.f32 1.0, %v2594_v37  ;;  %2613 = vpow2.f32 %v1634_v9  ;;  %v3518_v40 = vpop.f32.mrb[60].mxu1  ;;  %v3524_v21 = vadd.f32 %v3425_v55, %v1284_v0 }
 0x1dd   :  { %v2598_v42 = vpop.eup %2597  ;;  %v1564_v30 = vadd.f32 %v1563_v54, %v1533_v26  ;;  %v1440_v41 = vadd.f32 1.0, %v2596_v15  ;;  %v3526_v25 = vpop.f32.mrb[61].mxu1  ;;  %v3529_v17 = vadd.f32 %v3425_v55, %v566_v2  ;;  %v1635_v39 = vmul.f32 -1.442695, %v3521_v48 }
 0x1de   :  { %v2600_v32 = vpop.eup %2599  ;;  %v821_v62 = vmul.f32 %v2598_v42, %v3384_v63  ;;  %2615 = vrcp.f32 %v727_v29  ;;  %v1844_v63 = vpop.f32.mrb[61].mxu0  ;;  %v1731_v8 = vmul.f32 -1.442695, %v3524_v21  ;;  %v1285_v4 = vmul.f32 %v3415_v59, %v1948_v57 }
 0x1df   :  { %v2602_v61 = vpop.eup %2601  ;;  %2617 = vrcp.f32 %v1440_v41  ;;  %v728_v47 = vadd.f32 1.0, %v2600_v32  ;;  %v3531_v24 = vpop.f32.mrb[62].mxu0  ;;  %v1636_v54 = vmul.f32 -1.442695, %v3529_v17  ;;  %v1839_v9 = vadd.f32 %v3485_v53, %v3476_v34 }
 0x1e0   :  { %v2604_v36 = vpop.eup %2603  ;;  %v852_v35 = vadd.f32 %v851_v19, %v821_v62  ;;  %v1441_v7 = vadd.f32 1.0, %v2602_v61  ;;  %2619 = vpow2.f32 %v1730_v28  ;;  %v3533_v44 = vpop.f32.mrb[62].mxu1  ;;  %v1951_v31 = vadd.f32 %v3487_v58, %v3478_v51 }
 0x1e1   :  { %v1534_v43 = vmul.f32 %v2604_v36, %v3392_v6  ;;  %2621 = vrcp.f32 %v728_v47  ;;  %v3538_v27 = vpop.f32.mrb[63].mxu0  ;;  %v3540_v33 = vpop.f32.mrb[63].mxu1  ;;  %v3549_v11 = vadd.f32 %v3425_v55, %v1285_v4  ;;  %v567_v16 = vmul.f32 %v3415_v59, %v1839_v9 }
 0x1e2   :  { %v2606_v14 = vpop.eup %2605  ;;  %2623 = vrcp.f32 %v1441_v7  ;;  %v1286_v34 = vmul.f32 %v3415_v59, %v1951_v31  ;;  %v1842_v53 = vadd.f32 %v3495_v13, %v3490_v60  ;;  %v1954_v62 = vadd.f32 %v3497_v10, %v3492_v52 }
 0x1e3   :  { %v2608_v18 = vpop.eup %2607  ;;  %v1565_v6 = vadd.f32 %v1564_v30, %v1534_v43  ;;  %v729_v56 = vadd.f32 1.0, %v2606_v14  ;;  %2625 = vpow2.f32 %v1635_v39  ;;  %v1732_v58 = vmul.f32 -1.442695, %v3549_v11 }
 0x1e4   :  { %v2610_v37 = vpop.eup %2609  ;;  %v1442_v26 = vadd.f32 1.0, %v2608_v18  ;;  %2627 = vpow2.f32 %v1731_v8  ;;  %v3559_v28 = vadd.f32 %v3425_v55, %v567_v16  ;;  %v568_v13 = vmul.f32 %v3415_v59, %v1842_v53 }
 0x1e5   :  { %v2612_v15 = vpop.eup %2611  ;;  %v822_v19 = vmul.f32 %v2610_v37, %v3395_v5  ;;  %2629 = vrcp.f32 %v729_v56  ;;  %v3562_v5 = vadd.f32 %v3425_v55, %v1286_v34  ;;  %v1845_v47 = vadd.f32 %v1844_v63, %v3516_v12 }
 0x1e6   :  { %v2614_v29 = vpop.eup %2613  ;;  %v1535_v51 = vmul.f32 %v2612_v15, %v3399_v20  ;;  %2631 = vrcp.f32 %v1442_v26  ;;  %v1637_v60 = vmul.f32 -1.442695, %v3559_v28  ;;  %v3572_v61 = vadd.f32 %v3425_v55, %v568_v13 }
 0x1e7   :  { %v853_v42 = vadd.f32 %v852_v35, %v822_v19  ;;  %v730_v30 = vadd.f32 1.0, %v2614_v29  ;;  %2633 = vpow2.f32 %v1636_v54  ;;  %v1733_v32 = vmul.f32 -1.442695, %v3562_v5 }
 0x1e8   :  { %v2616_v41 = vpop.eup %2615  ;;  %v1566_v1 = vadd.f32 %v1565_v6, %v1535_v51  ;;  %2635 = vpow2.f32 %v1732_v58  ;;  %v1638_v52 = vmul.f32 -1.442695, %v3572_v61  ;;  %v1957_v63 = vadd.f32 %v3526_v25, %v3518_v40 }
 0x1e9   :  { %v2618_v20 = vpop.eup %2617  ;;  %v823_v0 = vmul.f32 %v2616_v41, %v3428_v45  ;;  %2637 = vrcp.f32 %v730_v30  ;;  %v1287_v45 = vmul.f32 %v3415_v59, %v1954_v62  ;;  %v1848_v25 = vadd.f32 %v3538_v27, %v3531_v24 }
 0x1ea   :  { %v2620_v2 = vpop.eup %2619  ;;  %v1536_v57 = vmul.f32 %v2618_v20, %v3432_v49  ;;  %2639 = vpow2.f32 %v1637_v60  ;;  %v569_v49 = vmul.f32 %v3415_v59, %v1845_v47  ;;  %v1960_v34 = vadd.f32 %v3540_v33, %v3533_v44 }
 0x1eb   :  { %v2622_v36 = vpop.eup %2621  ;;  %v854_v35 = vadd.f32 %v853_v42, %v823_v0  ;;  %v1443_v7 = vadd.f32 1.0, %v2620_v2  ;;  %2641 = vpow2.f32 %v1733_v32  ;;  %v3581_v12 = vadd.f32 %v3425_v55, %v1287_v45 }
 0x1ec   :  { %v2624_v43 = vpop.eup %2623  ;;  %v1567_v39 = vadd.f32 %v1566_v1, %v1536_v57  ;;  %v824_v8 = vmul.f32 %v2622_v36, %v3441_v3  ;;  %v3586_v3 = vadd.f32 %v3425_v55, %v569_v49  ;;  %v1289_v44 = vmul.f32 %v3415_v59, %v1960_v34 }
 0x1ed   :  { %v2626_v10 = vpop.eup %2625  ;;  %v1537_v14 = vmul.f32 %v2624_v43, %v3455_v23  ;;  %2643 = vrcp.f32 %v1443_v7  ;;  %v1734_v31 = vmul.f32 -1.442695, %v3581_v12  ;;  %v1288_v23 = vmul.f32 %v3415_v59, %v1957_v63 }
 0x1ee   :  { %v2628_v54 = vpop.eup %2627  ;;  %v855_v4 = vadd.f32 %v854_v35, %v824_v8  ;;  %v731_v9 = vadd.f32 1.0, %v2626_v10  ;;  %2645 = vpow2.f32 %v1638_v52  ;;  %v1639_v40 = vmul.f32 -1.442695, %v3586_v3 }
 0x1ef   :  { %v2630_v18 = vpop.eup %2629  ;;  %v1568_v6 = vadd.f32 %v1567_v39, %v1537_v14  ;;  %v1444_v56 = vadd.f32 1.0, %v2628_v54  ;;  %v3596_v19 = vadd.f32 %v3425_v55, %v1288_v23  ;;  %v1321_v32 = vadd.f32 %v3425_v55, %v1289_v44 }
 0x1f0   :  { %v2632_v37 = vpop.eup %2631  ;;  %v825_v26 = vmul.f32 %v2630_v18, %v3465_v46  ;;  %2647 = vrcp.f32 %v731_v9  ;;  %v570_v46 = vmul.f32 %v3415_v59, %v1848_v25 }
 0x1f1   :  { %v2634_v16 = vpop.eup %2633  ;;  %v1538_v15 = vmul.f32 %v2632_v37, %v3469_v38  ;;  %2649 = vrcp.f32 %v1444_v56  ;;  %v1735_v24 = vmul.f32 -1.442695, %v3596_v19  ;;  %v1736_v57 = vmul.f32 -1.442695, %v1321_v32 }
 0x1f2   :  { %v2636_v53 = vpop.eup %2635  ;;  %v856_v29 = vadd.f32 %v855_v4, %v825_v26  ;;  %v732_v51 = vadd.f32 1.0, %v2634_v16  ;;  %2651 = vpow2.f32 %v1734_v31  ;;  %v3604_v41 = vadd.f32 %v3425_v55, %v570_v46 }
 0x1f3   :  { %v2638_v58 = vpop.eup %2637  ;;  %v1569_v42 = vadd.f32 %v1568_v6, %v1538_v15  ;;  %v1445_v30 = vadd.f32 1.0, %v2636_v53  ;;  %2653 = vpow2.f32 %v1639_v40 }
 0x1f4   :  { %v2640_v38 = vpop.eup %2639  ;;  %v826_v27 = vmul.f32 %v2638_v58, %v3483_v50  ;;  %2655 = vrcp.f32 %v732_v51  ;;  %v1640_v20 = vmul.f32 -1.442695, %v3604_v41 }
 0x1f5   :  { %v2642_v33 = vpop.eup %2641  ;;  %2657 = vrcp.f32 %v1445_v30  ;;  %v733_v1 = vadd.f32 1.0, %v2640_v38 }
 0x1f6   :  { %v857_v60 = vadd.f32 %v856_v29, %v826_v27  ;;  %v1446_v13 = vadd.f32 1.0, %v2642_v33  ;;  %2659 = vpow2.f32 %v1735_v24 }
 0x1f7   :  { %v2644_v0 = vpop.eup %2643  ;;  %2661 = vrcp.f32 %v733_v1 }
 0x1f8   :  { %v2646_v62 = vpop.eup %2645  ;;  %v1539_v50 = vmul.f32 %v2644_v0, %v3501_v22  ;;  %2663 = vrcp.f32 %v1446_v13 }
 0x1f9   :  { %v734_v2 = vadd.f32 1.0, %v2646_v62  ;;  %2665 = vpow2.f32 %v1640_v20 }
 0x1fa   :  { %v2648_v59 = vpop.eup %2647  ;;  %v1570_v47 = vadd.f32 %v1569_v42, %v1539_v50 }
 0x1fb   :  { %v2650_v36 = vpop.eup %2649  ;;  %v827_v35 = vmul.f32 %v2648_v59, %v3521_v48  ;;  %2667 = vrcp.f32 %v734_v2 }
 0x1fc   :  { %v2652_v7 = vpop.eup %2651  ;;  %v1540_v45 = vmul.f32 %v2650_v36, %v3524_v21  ;;  %2669 = vpow2.f32 %v1736_v57 }
 0x1fd   :  { %v2654_v43 = vpop.eup %2653  ;;  %v858_v39 = vadd.f32 %v857_v60, %v827_v35  ;;  %v1447_v55 = vadd.f32 1.0, %v2652_v7 }
 0x1fe   :  { %v2656_v8 = vpop.eup %2655  ;;  %v1571_v52 = vadd.f32 %v1570_v47, %v1540_v45  ;;  %v735_v22 = vadd.f32 1.0, %v2654_v43 }
 0x1ff   :  { %v2658_v49 = vpop.eup %2657  ;;  %v828_v10 = vmul.f32 %v2656_v8, %v3529_v17  ;;  %2671 = vrcp.f32 %v1447_v55 }
 0x200   :  { %v2660_v14 = vpop.eup %2659  ;;  %v1541_v63 = vmul.f32 %v2658_v49, %v3549_v11  ;;  %2673 = vrcp.f32 %v735_v22 }
 0x201   :  { %v2662_v48 = vpop.eup %2661  ;;  %v859_v54 = vadd.f32 %v858_v39, %v828_v10  ;;  %v1448_v4 = vadd.f32 1.0, %v2660_v14 }
 0x202   :  { %v2664_v9 = vpop.eup %2663  ;;  %v1572_v21 = vadd.f32 %v1571_v52, %v1541_v63  ;;  %v829_v18 = vmul.f32 %v2662_v48, %v3559_v28 }
 0x203   :  { %v2666_v6 = vpop.eup %2665  ;;  %v1542_v56 = vmul.f32 %v2664_v9, %v3562_v5  ;;  %2675 = vrcp.f32 %v1448_v4 }
 0x204   :  { %v860_v31 = vadd.f32 %v859_v54, %v829_v18  ;;  %v736_v23 = vadd.f32 1.0, %v2666_v6 }
 0x205   :  { %v2668_v37 = vpop.eup %2667  ;;  %v1573_v17 = vadd.f32 %v1572_v21, %v1542_v56 }
 0x206   :  { %v2670_v26 = vpop.eup %2669  ;;  %v830_v40 = vmul.f32 %v2668_v37, %v3572_v61  ;;  %2677 = vrcp.f32 %v736_v23 }
 0x207   :  { %v1449_v11 = vadd.f32 1.0, %v2670_v26 }
 0x208   :  { %v861_v25 = vadd.f32 %v860_v31, %v830_v40 }
 0x209   :  { %v2672_v16 = vpop.eup %2671  ;;  %2679 = vrcp.f32 %v1449_v11 }
 0x20a   :  { %v2674_v15 = vpop.eup %2673  ;;  %v1543_v34 = vmul.f32 %v2672_v16, %v3581_v12 }
 0x20b   :  { %v831_v28 = vmul.f32 %v2674_v15, %v3586_v3 }
 0x20c   :  { %v1574_v53 = vadd.f32 %v1573_v17, %v1543_v34 }
 0x20d   :  { %v2676_v5 = vpop.eup %2675  ;;  %v862_v29 = vadd.f32 %v861_v25, %v831_v28 }
 0x20e   :  { %v1544_v51 = vmul.f32 %v2676_v5, %v3596_v19 }
 0x210   :  { %v2678_v46 = vpop.eup %2677  ;;  %v1575_v58 = vadd.f32 %v1574_v53, %v1544_v51 }
 0x211   :  { %v832_v42 = vmul.f32 %v2678_v46, %v3604_v41 }
 0x213   :  { %v2680_v61 = vpop.eup %2679  ;;  %v863_v30 = vadd.f32 %v862_v29, %v832_v42 }
 0x214   :  { %v1545_v24 = vmul.f32 %v2680_v61, %v1321_v32 }
 0x215   :  { %v864_v38 = vrot.slane %v863_v30, 4 }
 0x216   :  { %v1576_v27 = vadd.f32 %v1575_v58, %v1545_v24 }
 0x217   :  { %v865_v44 = vadd.f32 %v864_v38, %v863_v30 }
 0x218   :  { %v1577_v33 = vrot.slane %v1576_v27, 4 }
 0x219   :  { %v866_v1 = vrot.slane %v865_v44, 2 }
 0x21a   :  { %v1578_v12 = vadd.f32 %v1577_v33, %v1576_v27 }
 0x21b   :  { %v867_v60 = vadd.f32 %v866_v1, %v865_v44 }
 0x21c   :  { %v1579_v3 = vrot.slane %v1578_v12, 2 }
 0x21d   :  { %v868_v13 = vrot.slane %v867_v60, 1 }
 0x21e   :  { %v1580_v20 = vadd.f32 %v1579_v3, %v1578_v12 }
 0x21f   :  { %v869_v0 = vadd.f32 %v868_v13, %v867_v60 }
 0x220   :  { %v1581_v62 = vrot.slane %v1580_v20, 1 }
 0x221   :  { %v871_v19 = vmul.f32 0.00390625, %v869_v0 }
 0x222   :  { %v1582_v50 = vadd.f32 %v1581_v62, %v1580_v20 }
 0x224   :  { %v1583_v2 = vmul.f32 0.00390625, %v1582_v50 }
 0x226   :  { %v1585_v41 = vsel %vm1584_vm0, %v871_v19, %v1583_v2 }
 0x227   :  { %1586 = vst [vmem:[%s3628_s4] sm:$0x3] %v1585_v41 }

</bundles_post_ra>
